<compile_context>
chip_gen: v6e
topology: v6e:2x2x1
jax: 0.10.0
libtpu: 0.0.40
codegen_flags: <defaults>
</compile_context>

<pallas_src>
from functools import partial

import jax
import jax.numpy as jnp
from jax.experimental import pallas as pl
from jax.experimental.pallas import tpu as pltpu

# ----------------------------- model dims ---------------------------------
N_FEATS = 16      # n_feats (mel channels)
SPK_DIM = 8       # spk_emb_dim
EMO_DIM = 8       # emo_emb_dim
HIDDEN = 64       # hidden width of the stand-in estimator
TIME_DIM = 8      # sinusoidal time-embedding width
SIGMA_MIN = 1e-4  # cfm_params['sigma_min'] (unused in the sampling path)


# ----------------------------- Pallas kernel -------------------------------
def _cfm_euler_kernel(dts_ref,                     # SMEM (n_steps,)  dt per step
                      x0_ref, mu_ref, mask_ref,    # (1,C,T), (1,C,T), (1,1,T)
                      cond_ref,                    # (1,H,1)  spk/emo/b1 bias (f32)
                      tproj_ref,                   # (n_steps,H,1)  temb@W_t (f32)
                      w1xT_ref, w1mT_ref,          # (H,C), (H,C)  bf16
                      w2T_ref, b2T_ref,            # (C,H) bf16, (C,1) f32
                      out_ref,                     # (1,C,T)
                      x_st, pre_st):               # VMEM (C,T) f32, (H,T) ew
    n_steps = dts_ref.shape[0]
    ew = pre_st.dtype                              # bf16 on v6e/v7x, f32 on v5e

    mask = mask_ref[0]                             # (1, T) f32
    w1xT = w1xT_ref[...]                           # (H, C) bf16 (pre-cast on host)
    w2T = w2T_ref[...]                             # (C, H) bf16
    b2 = b2T_ref[...]                              # (C, 1) f32

    # Step-invariant hidden pre-activation, computed ONCE per tile:
    #   W1_mu^T @ mu  +  (spk@W1_spk + emo@W1_emo + b1)
    pre = jnp.dot(w1mT_ref[...], mu_ref[0].astype(jnp.bfloat16),
                  preferred_element_type=jnp.float32)            # (H, T) f32
    pre_st[...] = (pre + cond_ref[0]).astype(ew)

    # State x stays resident in VMEM across the entire Euler solve.
    x_st[...] = x0_ref[0]

    # Unroll short time loops so the scheduler can overlap adjacent steps.
    @pl.loop(0, n_steps, unroll=(n_steps <= 16))
    def _(step):
        x = x_st[...]                                            # (C, T) f32
        h = jnp.dot(w1xT, x.astype(jnp.bfloat16),
                    preferred_element_type=jnp.float32)          # (H, T) f32
        # bias add + tanh in the elementwise dtype (bf16 on v6e/v7x)
        h = jnp.tanh(h.astype(ew) + pre_st[...]
                     + tproj_ref[step].astype(ew))               # (H, T) ew
        dphi = jnp.dot(w2T, h.astype(jnp.bfloat16),
                       preferred_element_type=jnp.float32) + b2  # (C, T) f32
        dtm = dts_ref[step] * mask                               # (1, T): dt folded into mask
        x_st[...] = x + dtm * dphi                               # masked Euler update

    out_ref[0] = x_st[...]


# ----------------------------- pallas_call wrapper --------------------------
@partial(jax.jit, static_argnames=("t_tile", "bf16_elem"))
def _cfm_solve(dts, x0, mu, mask, cond, tproj, w1xT, w1mT, w2T, b2T,
               *, t_tile, bf16_elem):
    B, C, Lp = x0.shape
    H = w1xT.shape[0]
    n_steps = dts.shape[0]
    grid = (B, Lp // t_tile)
    ew = jnp.bfloat16 if bf16_elem else jnp.float32

    def full_spec(shape):
        n = len(shape)
        return pl.BlockSpec(shape, lambda *args, _n=n: (0,) * _n)

    in_specs = [
        pl.BlockSpec(memory_space=pltpu.MemorySpace.SMEM),       # dts
        pl.BlockSpec((1, C, t_tile), lambda b, l: (b, 0, l)),    # x0 (noise)
        pl.BlockSpec((1, C, t_tile), lambda b, l: (b, 0, l)),    # mu
        pl.BlockSpec((1, 1, t_tile), lambda b, l: (b, 0, l)),    # mask
        pl.BlockSpec((1, H, 1), lambda b, l: (b, 0, 0)),         # cond bias
        full_spec((n_steps, H, 1)),                              # tproj
        full_spec((H, C)),                                       # W1_x^T (bf16)
        full_spec((H, C)),                                       # W1_mu^T (bf16)
        full_spec((C, H)),                                       # W2^T (bf16)
        full_spec((C, 1)),                                       # b2^T (f32)
    ]
    out_specs = pl.BlockSpec((1, C, t_tile), lambda b, l: (b, 0, l))

    # Rough VMEM footprint -> explicit limit (insurance for v7x's 64 MiB VMEM).
    tile_bytes = (2 * 2 * C * t_tile * 4        # x0, mu (double-buffered)
                  + 2 * 1 * t_tile * 4          # mask
                  + 2 * C * t_tile * 4          # out
                  + C * t_tile * 4              # x scratch
                  + H * t_tile * (2 if bf16_elem else 4))   # pre-act scratch
    vmem_limit = min(32 * 1024 * 1024, 4 * tile_bytes + (4 << 20))

    return pl.pallas_call(
        _cfm_euler_kernel,
        out_shape=jax.ShapeDtypeStruct((B, C, Lp), jnp.float32),
        grid=grid,
        in_specs=in_specs,
        out_specs=out_specs,
        scratch_shapes=[pltpu.VMEM((C, t_tile), jnp.float32),   # x state
                        pltpu.VMEM((H, t_tile), ew)],           # static pre-act
        compiler_params=pltpu.CompilerParams(
            dimension_semantics=("parallel", "parallel"),
            vmem_limit_bytes=vmem_limit),
    )(dts, x0, mu, mask, cond, tproj, w1xT, w1mT, w2T, b2T)


# ----------------------------- host-side helpers ----------------------------
def _bf16_elementwise_ok():
    """bf16 VPU/EUP exists on v6e/v7x; keep f32 elementwise math on v5 and older."""
    try:
        kind = jax.devices()[0].device_kind.lower()
    except Exception:
        return False
    return not any(v in kind for v in ("v2", "v3", "v4", "v5"))


def _pick_tile(L, B, max_tile=4096, lane=128):
    """Single source of truth for the lane tile and the padded length."""
    Lp0 = pl.cdiv(L, lane) * lane
    n_tiles = pl.cdiv(Lp0, max_tile)
    if B == 1 and Lp0 >= 2 * lane:
        n_tiles = max(n_tiles, 2)          # keep both v7x TensorCores busy
    t_tile = pl.cdiv(pl.cdiv(Lp0, n_tiles), lane) * lane
    Lp = n_tiles * t_tile
    return t_tile, Lp


def _time_embedding(ts):
    """Sinusoidal embedding of the diffusion times -> (n_steps, TIME_DIM)."""
    freqs = 2.0 ** jnp.arange(TIME_DIM // 2, dtype=jnp.float32)
    ang = ts[:, None] * freqs[None, :]
    return jnp.concatenate([jnp.sin(ang), jnp.cos(ang)], axis=-1)


def _euler_schedule(n_timesteps, t_scheduler=""):
    """Exact CFM.solve_euler t/dt recurrence (t accumulates; dt re-anchored)."""
    t_span = jnp.linspace(0.0, 1.0, n_timesteps + 1, dtype=jnp.float32)
    if t_scheduler == "cosine":
        t_span = 1.0 - jnp.cos(t_span * 0.5 * jnp.pi)
    ts, dts = [], []
    t = t_span[0]
    dt = t_span[1] - t_span[0]
    for step in range(1, n_timesteps + 1):
        ts.append(t)
        dts.append(dt)
        t = t + dt
        if step < n_timesteps:
            dt = t_span[step + 1] - t
    return (jnp.stack(ts).astype(jnp.float32),
            jnp.stack(dts).astype(jnp.float32))


def cfm_forward(mu_ncl, mask_n1l, n_timesteps, params, key,
                temperature=1.0, spks=None, emo=None, t_scheduler=""):
    """Mirrors CFM.forward / CFM.solve_euler.

    mu_ncl:   (B, n_feats, L)   encoder output (PyTorch NCL layout)
    mask_n1l: (B, 1, L)         output mask
    returns:  (B, n_feats, L)   generated mel-spectrogram
    """
    B, C, L = mu_ncl.shape
    w1x, w1m, w1s, w1e, wt, b1, w2, b2 = params
    if spks is None:
        spks = jnp.zeros((B, SPK_DIM), jnp.float32)
    if emo is None:
        emo = jnp.zeros((B, EMO_DIM), jnp.float32)

    z = jax.random.normal(key, (B, C, L), dtype=jnp.float32) * temperature

    ts, dts = _euler_schedule(n_timesteps, t_scheduler)

    # Step-invariant conditioning, hoisted out of the Euler loop.
    temb = _time_embedding(ts)                                   # (n_steps, TIME_DIM)
    tproj = (temb @ wt)[:, :, None].astype(jnp.float32)          # (n_steps, H, 1)
    cond = (spks.astype(jnp.float32) @ w1s
            + emo.astype(jnp.float32) @ w1e
            + b1)[:, :, None].astype(jnp.float32)                # (B, H, 1)

    bf16_elem = _bf16_elementwise_ok()

    # Lane-dense NCL layout: pad L up to a multiple of the (single) lane tile.
    t_tile, Lp = _pick_tile(L, B)
    pad = Lp - L
    if pad:
        z = jnp.pad(z, ((0, 0), (0, 0), (0, pad)))
        mu_p = jnp.pad(mu_ncl, ((0, 0), (0, 0), (0, pad)))
        mask_p = jnp.pad(mask_n1l, ((0, 0), (0, 0), (0, pad)))
    else:
        mu_p, mask_p = mu_ncl, mask_n1l

    out = _cfm_solve(dts, z,
                     mu_p.astype(jnp.float32), mask_p.astype(jnp.float32),
                     cond, tproj,
                     w1x.T.astype(jnp.bfloat16), w1m.T.astype(jnp.bfloat16),
                     w2.T.astype(jnp.bfloat16), b2.T.astype(jnp.float32),
                     t_tile=t_tile, bf16_elem=bf16_elem)
    return out[:, :, :L]


def _cfm_reference(mu, mask, dts, ts, z, params, spks, emo):
    """Pure-JAX f32 reference of the same stand-in estimator + Euler solve."""
    w1x, w1m, w1s, w1e, wt, b1, w2, b2 = params
    tproj = _time_embedding(ts) @ wt                     # (n_steps, H)
    cond = spks @ w1s + emo @ w1e + b1                   # (B, H)
    pre = jnp.einsum("ch,bcl->bhl", w1m, mu) + cond[:, :, None]
    x = z
    for s in range(dts.shape[0]):
        h = jnp.tanh(jnp.einsum("ch,bcl->bhl", w1x, x) + pre
                     + tproj[s][None, :, None])
        dphi = jnp.einsum("hc,bhl->bcl", w2, h) + b2.T[None]
        dphi = dphi * mask
        x = x + dts[s] * dphi
    return x


def init_params(key):
    ks = jax.random.split(key, 6)

    def w(k, shape, scale=0.1):
        return jax.random.normal(k, shape, dtype=jnp.float32) * scale

    w1x = w(ks[0], (N_FEATS, HIDDEN))
    w1m = w(ks[1], (N_FEATS, HIDDEN))
    w1s = w(ks[2], (SPK_DIM, HIDDEN))
    w1e = w(ks[3], (EMO_DIM, HIDDEN))
    wt = w(ks[4], (TIME_DIM, HIDDEN))
    b1 = jnp.zeros((1, HIDDEN), jnp.float32)
    w2 = w(ks[5], (HIDDEN, N_FEATS))
    b2 = jnp.zeros((1, N_FEATS), jnp.float32)
    return (w1x, w1m, w1s, w1e, wt, b1, w2, b2)


if __name__ == "__main__":
    key = jax.random.PRNGKey(0)
    k_mu, k_spk, k_emo, k_noise, k_param = jax.random.split(key, 5)

    B, L = 2, 200                        # L not a multiple of 128 -> exercises padding
    mu = jax.random.normal(k_mu, (B, N_FEATS, L), dtype=jnp.float32)
    mask = jnp.ones((B, 1, L), dtype=jnp.float32)
    mask = mask.at[1, :, 160:].set(0.0)  # ragged second example
    spks = jax.random.normal(k_spk, (B, SPK_DIM), dtype=jnp.float32)
    emo = jax.random.normal(k_emo, (B, EMO_DIM), dtype=jnp.float32)
    params = init_params(k_param)

    n_timesteps = 8
    out = cfm_forward(mu, mask, n_timesteps=n_timesteps, params=params,
                      key=k_noise, temperature=1.0, spks=spks, emo=emo)
    out = jax.block_until_ready(out)

    # Correctness check against an all-f32 pure-JAX reference (loose tolerance
    # because the kernel uses bf16 MXU operands; error compounds over steps).
    ts, dts = _euler_schedule(n_timesteps, "")
    z = jax.random.normal(k_noise, (B, N_FEATS, L), dtype=jnp.float32) * 1.0
    ref = _cfm_reference(mu, mask, dts, ts, z, params, spks, emo)
    err = float(jnp.max(jnp.abs(out - ref)))

    assert out.shape == (B, N_FEATS, L)
    assert bool(jnp.all(jnp.isfinite(out)))
    assert err < 5e-2, f"max |kernel - reference| = {err}"
    print("KERNEL_OK")
</pallas_src>

<mosaic_0001>
module attributes {stable_mosaic.version = 11 : i64} {
  func.func @_cfm_euler_kernel(%arg0: i32, %arg1: i32, %arg2: memref<8xf32, #tpu.memory_space<smem>>, %arg3: memref<1x16x256xf32, #tpu.memory_space<vmem>>, %arg4: memref<1x16x256xf32, #tpu.memory_space<vmem>>, %arg5: memref<1x1x256xf32, #tpu.memory_space<vmem>>, %arg6: memref<1x64x1xf32, #tpu.memory_space<vmem>>, %arg7: memref<8x64x1xf32, #tpu.memory_space<vmem>>, %arg8: memref<64x16xbf16, #tpu.memory_space<vmem>>, %arg9: memref<64x16xbf16, #tpu.memory_space<vmem>>, %arg10: memref<16x64xbf16, #tpu.memory_space<vmem>>, %arg11: memref<16x1xf32, #tpu.memory_space<vmem>>, %arg12: memref<1x16x256xf32, #tpu.memory_space<vmem>>, %arg13: memref<16x256xf32, #tpu.memory_space<vmem>>, %arg14: memref<64x256xbf16, #tpu.memory_space<vmem>>) attributes {dimension_semantics = [#tpu.dimension_semantics<parallel>, #tpu.dimension_semantics<parallel>], iteration_bounds = array<i64: 2, 1>, scalar_prefetch = 0 : i64, scratch_operands = 2 : i64, tpu.core_type = #tpu.core_type<tc>, window_params = [{transform_indices = @transform_0, window_bounds = array<i64: 8>}, {transform_indices = @transform_1, window_bounds = array<i64: 1, 16, 256>}, {transform_indices = @transform_2, window_bounds = array<i64: 1, 16, 256>}, {transform_indices = @transform_3, window_bounds = array<i64: 1, 1, 256>}, {transform_indices = @transform_4, window_bounds = array<i64: 1, 64, 1>}, {pipeline_mode = #tpu.pipeline_mode<synchronous>, transform_indices = @transform_5, window_bounds = array<i64: 8, 64, 1>}, {pipeline_mode = #tpu.pipeline_mode<synchronous>, transform_indices = @transform_6, window_bounds = array<i64: 64, 16>}, {pipeline_mode = #tpu.pipeline_mode<synchronous>, transform_indices = @transform_7, window_bounds = array<i64: 64, 16>}, {pipeline_mode = #tpu.pipeline_mode<synchronous>, transform_indices = @transform_8, window_bounds = array<i64: 16, 64>}, {pipeline_mode = #tpu.pipeline_mode<synchronous>, transform_indices = @transform_9, window_bounds = array<i64: 16, 1>}, {transform_indices = @transform_10, window_bounds = array<i64: 1, 16, 256>}]} {
    %c0 = arith.constant 0 : index
    %c0_0 = arith.constant 0 : index
    %c0_1 = arith.constant 0 : index
    %0 = vector.load %arg5[%c0, %c0_0, %c0_1] : memref<1x1x256xf32, #tpu.memory_space<vmem>>, vector<1x1x256xf32>
    %1 = vector.shape_cast %0 : vector<1x1x256xf32> to vector<1x256xf32>
    %c0_2 = arith.constant 0 : index
    %c0_3 = arith.constant 0 : index
    %2 = vector.load %arg8[%c0_2, %c0_3] : memref<64x16xbf16, #tpu.memory_space<vmem>>, vector<64x16xbf16>
    %c0_4 = arith.constant 0 : index
    %c0_5 = arith.constant 0 : index
    %3 = vector.load %arg10[%c0_4, %c0_5] : memref<16x64xbf16, #tpu.memory_space<vmem>>, vector<16x64xbf16>
    %c0_6 = arith.constant 0 : index
    %c0_7 = arith.constant 0 : index
    %4 = vector.load %arg11[%c0_6, %c0_7] : memref<16x1xf32, #tpu.memory_space<vmem>>, vector<16x1xf32>
    %c0_8 = arith.constant 0 : index
    %c0_9 = arith.constant 0 : index
    %5 = vector.load %arg9[%c0_8, %c0_9] : memref<64x16xbf16, #tpu.memory_space<vmem>>, vector<64x16xbf16>
    %c0_10 = arith.constant 0 : index
    %c0_11 = arith.constant 0 : index
    %c0_12 = arith.constant 0 : index
    %6 = vector.load %arg4[%c0_10, %c0_11, %c0_12] : memref<1x16x256xf32, #tpu.memory_space<vmem>>, vector<1x16x256xf32>
    %7 = vector.shape_cast %6 : vector<1x16x256xf32> to vector<16x256xf32>
    %8 = arith.truncf %7 : vector<16x256xf32> to vector<16x256xbf16>
    %cst = arith.constant dense<0.000000e+00> : vector<64x256xf32>
    %9 = tpu.matmul %5, %8, %cst {dimension_numbers = #tpu.dot_dimension_numbers<[1], [0], [0], [1], [0, 0, 1, 1], [], []>} : vector<64x16xbf16>, vector<16x256xbf16>, vector<64x256xf32> -> vector<64x256xf32>
    %c0_13 = arith.constant 0 : index
    %c0_14 = arith.constant 0 : index
    %c0_15 = arith.constant 0 : index
    %10 = vector.load %arg6[%c0_13, %c0_14, %c0_15] : memref<1x64x1xf32, #tpu.memory_space<vmem>>, vector<1x64x1xf32>
    %11 = vector.shape_cast %10 : vector<1x64x1xf32> to vector<64x1xf32>
    %12 = vector.broadcast %11 : vector<64x1xf32> to vector<64x256xf32>
    %13 = arith.addf %9, %12 : vector<64x256xf32>
    %14 = arith.truncf %13 : vector<64x256xf32> to vector<64x256xbf16>
    %c0_16 = arith.constant 0 : index
    %c0_17 = arith.constant 0 : index
    %15 = vector.load %arg14[%c0_16, %c0_17] : memref<64x256xbf16, #tpu.memory_space<vmem>>, vector<64x256xbf16>
    tpu.vector_store %arg14[%c0_16, %c0_17], %14 {strides = array<i32>} : memref<64x256xbf16, #tpu.memory_space<vmem>>, vector<64x256xbf16>,
    %c0_18 = arith.constant 0 : index
    %c0_19 = arith.constant 0 : index
    %c0_20 = arith.constant 0 : index
    %16 = vector.load %arg3[%c0_18, %c0_19, %c0_20] : memref<1x16x256xf32, #tpu.memory_space<vmem>>, vector<1x16x256xf32>
    %17 = vector.shape_cast %16 : vector<1x16x256xf32> to vector<16x256xf32>
    %c0_21 = arith.constant 0 : index
    %c0_22 = arith.constant 0 : index
    %18 = vector.load %arg13[%c0_21, %c0_22] : memref<16x256xf32, #tpu.memory_space<vmem>>, vector<16x256xf32>
    tpu.vector_store %arg13[%c0_21, %c0_22], %17 {strides = array<i32>} : memref<16x256xf32, #tpu.memory_space<vmem>>, vector<16x256xf32>,
    %c0_i32 = arith.constant 0 : i32
    %c1_i32 = arith.constant 1 : i32
    %19 = arith.muli %c0_i32, %c1_i32 : i32
    %c0_i32_23 = arith.constant 0 : i32
    %20 = arith.addi %c0_i32_23, %19 : i32
    %c0_24 = arith.constant 0 : index
    %c0_25 = arith.constant 0 : index
    %21 = vector.load %arg13[%c0_24, %c0_25] : memref<16x256xf32, #tpu.memory_space<vmem>>, vector<16x256xf32>
    %22 = arith.truncf %21 : vector<16x256xf32> to vector<16x256xbf16>
    %cst_26 = arith.constant dense<0.000000e+00> : vector<64x256xf32>
    %23 = tpu.matmul %2, %22, %cst_26 {dimension_numbers = #tpu.dot_dimension_numbers<[1], [0], [0], [1], [0, 0, 1, 1], [], []>} : vector<64x16xbf16>, vector<16x256xbf16>, vector<64x256xf32> -> vector<64x256xf32>
    %24 = arith.truncf %23 : vector<64x256xf32> to vector<64x256xbf16>
    %c0_27 = arith.constant 0 : index
    %c0_28 = arith.constant 0 : index
    %25 = vector.load %arg14[%c0_27, %c0_28] : memref<64x256xbf16, #tpu.memory_space<vmem>>, vector<64x256xbf16>
    %26 = arith.addf %24, %25 : vector<64x256xbf16>
    %27 = arith.index_cast %20 : i32 to index
    %c0_29 = arith.constant 0 : index
    %c0_30 = arith.constant 0 : index
    %28 = vector.load %arg7[%27, %c0_29, %c0_30] : memref<8x64x1xf32, #tpu.memory_space<vmem>>, vector<1x64x1xf32>
    %29 = vector.shape_cast %28 : vector<1x64x1xf32> to vector<64x1xf32>
    %30 = arith.truncf %29 : vector<64x1xf32> to vector<64x1xbf16>
    %31 = vector.broadcast %30 : vector<64x1xbf16> to vector<64x256xbf16>
    %32 = arith.addf %26, %31 : vector<64x256xbf16>
    %33 = math.tanh %32 : vector<64x256xbf16>
    %cst_31 = arith.constant dense<0.000000e+00> : vector<16x256xf32>
    %34 = tpu.matmul %3, %33, %cst_31 {dimension_numbers = #tpu.dot_dimension_numbers<[1], [0], [0], [1], [0, 0, 1, 1], [], []>} : vector<16x64xbf16>, vector<64x256xbf16>, vector<16x256xf32> -> vector<16x256xf32>
    %35 = vector.broadcast %4 : vector<16x1xf32> to vector<16x256xf32>
    %36 = arith.addf %34, %35 : vector<16x256xf32>
    %37 = arith.index_cast %20 : i32 to index
    %38 = memref.load %arg2[%37] : memref<8xf32, #tpu.memory_space<smem>>
    %39 = vector.broadcast %38 : f32 to vector<1x256xf32>
    %40 = arith.mulf %39, %1 : vector<1x256xf32>
    %41 = vector.broadcast %40 : vector<1x256xf32> to vector<16x256xf32>
    %42 = arith.mulf %41, %36 : vector<16x256xf32>
    %43 = arith.addf %21, %42 : vector<16x256xf32>
    %c0_32 = arith.constant 0 : index
    %c0_33 = arith.constant 0 : index
    %44 = vector.load %arg13[%c0_32, %c0_33] : memref<16x256xf32, #tpu.memory_space<vmem>>, vector<16x256xf32>
    tpu.vector_store %arg13[%c0_32, %c0_33], %43 {strides = array<i32>} : memref<16x256xf32, #tpu.memory_space<vmem>>, vector<16x256xf32>,
    %c1_i32_34 = arith.constant 1 : i32
    %c1_i32_35 = arith.constant 1 : i32
    %45 = arith.muli %c1_i32_34, %c1_i32_35 : i32
    %c0_i32_36 = arith.constant 0 : i32
    %46 = arith.addi %c0_i32_36, %45 : i32
    %c0_37 = arith.constant 0 : index
    %c0_38 = arith.constant 0 : index
    %47 = vector.load %arg13[%c0_37, %c0_38] : memref<16x256xf32, #tpu.memory_space<vmem>>, vector<16x256xf32>
    %48 = arith.truncf %47 : vector<16x256xf32> to vector<16x256xbf16>
    %cst_39 = arith.constant dense<0.000000e+00> : vector<64x256xf32>
    %49 = tpu.matmul %2, %48, %cst_39 {dimension_numbers = #tpu.dot_dimension_numbers<[1], [0], [0], [1], [0, 0, 1, 1], [], []>} : vector<64x16xbf16>, vector<16x256xbf16>, vector<64x256xf32> -> vector<64x256xf32>
    %50 = arith.truncf %49 : vector<64x256xf32> to vector<64x256xbf16>
    %c0_40 = arith.constant 0 : index
    %c0_41 = arith.constant 0 : index
    %51 = vector.load %arg14[%c0_40, %c0_41] : memref<64x256xbf16, #tpu.memory_space<vmem>>, vector<64x256xbf16>
    %52 = arith.addf %50, %51 : vector<64x256xbf16>
    %53 = arith.index_cast %46 : i32 to index
    %c0_42 = arith.constant 0 : index
    %c0_43 = arith.constant 0 : index
    %54 = vector.load %arg7[%53, %c0_42, %c0_43] : memref<8x64x1xf32, #tpu.memory_space<vmem>>, vector<1x64x1xf32>
    %55 = vector.shape_cast %54 : vector<1x64x1xf32> to vector<64x1xf32>
    %56 = arith.truncf %55 : vector<64x1xf32> to vector<64x1xbf16>
    %57 = vector.broadcast %56 : vector<64x1xbf16> to vector<64x256xbf16>
    %58 = arith.addf %52, %57 : vector<64x256xbf16>
    %59 = math.tanh %58 : vector<64x256xbf16>
    %cst_44 = arith.constant dense<0.000000e+00> : vector<16x256xf32>
    %60 = tpu.matmul %3, %59, %cst_44 {dimension_numbers = #tpu.dot_dimension_numbers<[1], [0], [0], [1], [0, 0, 1, 1], [], []>} : vector<16x64xbf16>, vector<64x256xbf16>, vector<16x256xf32> -> vector<16x256xf32>
    %61 = vector.broadcast %4 : vector<16x1xf32> to vector<16x256xf32>
    %62 = arith.addf %60, %61 : vector<16x256xf32>
    %63 = arith.index_cast %46 : i32 to index
    %64 = memref.load %arg2[%63] : memref<8xf32, #tpu.memory_space<smem>>
    %65 = vector.broadcast %64 : f32 to vector<1x256xf32>
    %66 = arith.mulf %65, %1 : vector<1x256xf32>
    %67 = vector.broadcast %66 : vector<1x256xf32> to vector<16x256xf32>
    %68 = arith.mulf %67, %62 : vector<16x256xf32>
    %69 = arith.addf %47, %68 : vector<16x256xf32>
    %c0_45 = arith.constant 0 : index
    %c0_46 = arith.constant 0 : index
    %70 = vector.load %arg13[%c0_45, %c0_46] : memref<16x256xf32, #tpu.memory_space<vmem>>, vector<16x256xf32>
    tpu.vector_store %arg13[%c0_45, %c0_46], %69 {strides = array<i32>} : memref<16x256xf32, #tpu.memory_space<vmem>>, vector<16x256xf32>,
    %c2_i32 = arith.constant 2 : i32
    %c1_i32_47 = arith.constant 1 : i32
    %71 = arith.muli %c2_i32, %c1_i32_47 : i32
    %c0_i32_48 = arith.constant 0 : i32
    %72 = arith.addi %c0_i32_48, %71 : i32
    %c0_49 = arith.constant 0 : index
    %c0_50 = arith.constant 0 : index
    %73 = vector.load %arg13[%c0_49, %c0_50] : memref<16x256xf32, #tpu.memory_space<vmem>>, vector<16x256xf32>
    %74 = arith.truncf %73 : vector<16x256xf32> to vector<16x256xbf16>
    %cst_51 = arith.constant dense<0.000000e+00> : vector<64x256xf32>
    %75 = tpu.matmul %2, %74, %cst_51 {dimension_numbers = #tpu.dot_dimension_numbers<[1], [0], [0], [1], [0, 0, 1, 1], [], []>} : vector<64x16xbf16>, vector<16x256xbf16>, vector<64x256xf32> -> vector<64x256xf32>
    %76 = arith.truncf %75 : vector<64x256xf32> to vector<64x256xbf16>
    %c0_52 = arith.constant 0 : index
    %c0_53 = arith.constant 0 : index
    %77 = vector.load %arg14[%c0_52, %c0_53] : memref<64x256xbf16, #tpu.memory_space<vmem>>, vector<64x256xbf16>
    %78 = arith.addf %76, %77 : vector<64x256xbf16>
    %79 = arith.index_cast %72 : i32 to index
    %c0_54 = arith.constant 0 : index
    %c0_55 = arith.constant 0 : index
    %80 = vector.load %arg7[%79, %c0_54, %c0_55] : memref<8x64x1xf32, #tpu.memory_space<vmem>>, vector<1x64x1xf32>
    %81 = vector.shape_cast %80 : vector<1x64x1xf32> to vector<64x1xf32>
    %82 = arith.truncf %81 : vector<64x1xf32> to vector<64x1xbf16>
    %83 = vector.broadcast %82 : vector<64x1xbf16> to vector<64x256xbf16>
    %84 = arith.addf %78, %83 : vector<64x256xbf16>
    %85 = math.tanh %84 : vector<64x256xbf16>
    %cst_56 = arith.constant dense<0.000000e+00> : vector<16x256xf32>
    %86 = tpu.matmul %3, %85, %cst_56 {dimension_numbers = #tpu.dot_dimension_numbers<[1], [0], [0], [1], [0, 0, 1, 1], [], []>} : vector<16x64xbf16>, vector<64x256xbf16>, vector<16x256xf32> -> vector<16x256xf32>
    %87 = vector.broadcast %4 : vector<16x1xf32> to vector<16x256xf32>
    %88 = arith.addf %86, %87 : vector<16x256xf32>
    %89 = arith.index_cast %72 : i32 to index
    %90 = memref.load %arg2[%89] : memref<8xf32, #tpu.memory_space<smem>>
    %91 = vector.broadcast %90 : f32 to vector<1x256xf32>
    %92 = arith.mulf %91, %1 : vector<1x256xf32>
    %93 = vector.broadcast %92 : vector<1x256xf32> to vector<16x256xf32>
    %94 = arith.mulf %93, %88 : vector<16x256xf32>
    %95 = arith.addf %73, %94 : vector<16x256xf32>
    %c0_57 = arith.constant 0 : index
    %c0_58 = arith.constant 0 : index
    %96 = vector.load %arg13[%c0_57, %c0_58] : memref<16x256xf32, #tpu.memory_space<vmem>>, vector<16x256xf32>
    tpu.vector_store %arg13[%c0_57, %c0_58], %95 {strides = array<i32>} : memref<16x256xf32, #tpu.memory_space<vmem>>, vector<16x256xf32>,
    %c3_i32 = arith.constant 3 : i32
    %c1_i32_59 = arith.constant 1 : i32
    %97 = arith.muli %c3_i32, %c1_i32_59 : i32
    %c0_i32_60 = arith.constant 0 : i32
    %98 = arith.addi %c0_i32_60, %97 : i32
    %c0_61 = arith.constant 0 : index
    %c0_62 = arith.constant 0 : index
    %99 = vector.load %arg13[%c0_61, %c0_62] : memref<16x256xf32, #tpu.memory_space<vmem>>, vector<16x256xf32>
    %100 = arith.truncf %99 : vector<16x256xf32> to vector<16x256xbf16>
    %cst_63 = arith.constant dense<0.000000e+00> : vector<64x256xf32>
    %101 = tpu.matmul %2, %100, %cst_63 {dimension_numbers = #tpu.dot_dimension_numbers<[1], [0], [0], [1], [0, 0, 1, 1], [], []>} : vector<64x16xbf16>, vector<16x256xbf16>, vector<64x256xf32> -> vector<64x256xf32>
    %102 = arith.truncf %101 : vector<64x256xf32> to vector<64x256xbf16>
    %c0_64 = arith.constant 0 : index
    %c0_65 = arith.constant 0 : index
    %103 = vector.load %arg14[%c0_64, %c0_65] : memref<64x256xbf16, #tpu.memory_space<vmem>>, vector<64x256xbf16>
    %104 = arith.addf %102, %103 : vector<64x256xbf16>
    %105 = arith.index_cast %98 : i32 to index
    %c0_66 = arith.constant 0 : index
    %c0_67 = arith.constant 0 : index
    %106 = vector.load %arg7[%105, %c0_66, %c0_67] : memref<8x64x1xf32, #tpu.memory_space<vmem>>, vector<1x64x1xf32>
    %107 = vector.shape_cast %106 : vector<1x64x1xf32> to vector<64x1xf32>
    %108 = arith.truncf %107 : vector<64x1xf32> to vector<64x1xbf16>
    %109 = vector.broadcast %108 : vector<64x1xbf16> to vector<64x256xbf16>
    %110 = arith.addf %104, %109 : vector<64x256xbf16>
    %111 = math.tanh %110 : vector<64x256xbf16>
    %cst_68 = arith.constant dense<0.000000e+00> : vector<16x256xf32>
    %112 = tpu.matmul %3, %111, %cst_68 {dimension_numbers = #tpu.dot_dimension_numbers<[1], [0], [0], [1], [0, 0, 1, 1], [], []>} : vector<16x64xbf16>, vector<64x256xbf16>, vector<16x256xf32> -> vector<16x256xf32>
    %113 = vector.broadcast %4 : vector<16x1xf32> to vector<16x256xf32>
    %114 = arith.addf %112, %113 : vector<16x256xf32>
    %115 = arith.index_cast %98 : i32 to index
    %116 = memref.load %arg2[%115] : memref<8xf32, #tpu.memory_space<smem>>
    %117 = vector.broadcast %116 : f32 to vector<1x256xf32>
    %118 = arith.mulf %117, %1 : vector<1x256xf32>
    %119 = vector.broadcast %118 : vector<1x256xf32> to vector<16x256xf32>
    %120 = arith.mulf %119, %114 : vector<16x256xf32>
    %121 = arith.addf %99, %120 : vector<16x256xf32>
    %c0_69 = arith.constant 0 : index
    %c0_70 = arith.constant 0 : index
    %122 = vector.load %arg13[%c0_69, %c0_70] : memref<16x256xf32, #tpu.memory_space<vmem>>, vector<16x256xf32>
    tpu.vector_store %arg13[%c0_69, %c0_70], %121 {strides = array<i32>} : memref<16x256xf32, #tpu.memory_space<vmem>>, vector<16x256xf32>,
    %c4_i32 = arith.constant 4 : i32
    %c1_i32_71 = arith.constant 1 : i32
    %123 = arith.muli %c4_i32, %c1_i32_71 : i32
    %c0_i32_72 = arith.constant 0 : i32
    %124 = arith.addi %c0_i32_72, %123 : i32
    %c0_73 = arith.constant 0 : index
    %c0_74 = arith.constant 0 : index
    %125 = vector.load %arg13[%c0_73, %c0_74] : memref<16x256xf32, #tpu.memory_space<vmem>>, vector<16x256xf32>
    %126 = arith.truncf %125 : vector<16x256xf32> to vector<16x256xbf16>
    %cst_75 = arith.constant dense<0.000000e+00> : vector<64x256xf32>
    %127 = tpu.matmul %2, %126, %cst_75 {dimension_numbers = #tpu.dot_dimension_numbers<[1], [0], [0], [1], [0, 0, 1, 1], [], []>} : vector<64x16xbf16>, vector<16x256xbf16>, vector<64x256xf32> -> vector<64x256xf32>
    %128 = arith.truncf %127 : vector<64x256xf32> to vector<64x256xbf16>
    %c0_76 = arith.constant 0 : index
    %c0_77 = arith.constant 0 : index
    %129 = vector.load %arg14[%c0_76, %c0_77] : memref<64x256xbf16, #tpu.memory_space<vmem>>, vector<64x256xbf16>
    %130 = arith.addf %128, %129 : vector<64x256xbf16>
    %131 = arith.index_cast %124 : i32 to index
    %c0_78 = arith.constant 0 : index
    %c0_79 = arith.constant 0 : index
    %132 = vector.load %arg7[%131, %c0_78, %c0_79] : memref<8x64x1xf32, #tpu.memory_space<vmem>>, vector<1x64x1xf32>
    %133 = vector.shape_cast %132 : vector<1x64x1xf32> to vector<64x1xf32>
    %134 = arith.truncf %133 : vector<64x1xf32> to vector<64x1xbf16>
    %135 = vector.broadcast %134 : vector<64x1xbf16> to vector<64x256xbf16>
    %136 = arith.addf %130, %135 : vector<64x256xbf16>
    %137 = math.tanh %136 : vector<64x256xbf16>
    %cst_80 = arith.constant dense<0.000000e+00> : vector<16x256xf32>
    %138 = tpu.matmul %3, %137, %cst_80 {dimension_numbers = #tpu.dot_dimension_numbers<[1], [0], [0], [1], [0, 0, 1, 1], [], []>} : vector<16x64xbf16>, vector<64x256xbf16>, vector<16x256xf32> -> vector<16x256xf32>
    %139 = vector.broadcast %4 : vector<16x1xf32> to vector<16x256xf32>
    %140 = arith.addf %138, %139 : vector<16x256xf32>
    %141 = arith.index_cast %124 : i32 to index
    %142 = memref.load %arg2[%141] : memref<8xf32, #tpu.memory_space<smem>>
    %143 = vector.broadcast %142 : f32 to vector<1x256xf32>
    %144 = arith.mulf %143, %1 : vector<1x256xf32>
    %145 = vector.broadcast %144 : vector<1x256xf32> to vector<16x256xf32>
    %146 = arith.mulf %145, %140 : vector<16x256xf32>
    %147 = arith.addf %125, %146 : vector<16x256xf32>
    %c0_81 = arith.constant 0 : index
    %c0_82 = arith.constant 0 : index
    %148 = vector.load %arg13[%c0_81, %c0_82] : memref<16x256xf32, #tpu.memory_space<vmem>>, vector<16x256xf32>
    tpu.vector_store %arg13[%c0_81, %c0_82], %147 {strides = array<i32>} : memref<16x256xf32, #tpu.memory_space<vmem>>, vector<16x256xf32>,
    %c5_i32 = arith.constant 5 : i32
    %c1_i32_83 = arith.constant 1 : i32
    %149 = arith.muli %c5_i32, %c1_i32_83 : i32
    %c0_i32_84 = arith.constant 0 : i32
    %150 = arith.addi %c0_i32_84, %149 : i32
    %c0_85 = arith.constant 0 : index
    %c0_86 = arith.constant 0 : index
    %151 = vector.load %arg13[%c0_85, %c0_86] : memref<16x256xf32, #tpu.memory_space<vmem>>, vector<16x256xf32>
    %152 = arith.truncf %151 : vector<16x256xf32> to vector<16x256xbf16>
    %cst_87 = arith.constant dense<0.000000e+00> : vector<64x256xf32>
    %153 = tpu.matmul %2, %152, %cst_87 {dimension_numbers = #tpu.dot_dimension_numbers<[1], [0], [0], [1], [0, 0, 1, 1], [], []>} : vector<64x16xbf16>, vector<16x256xbf16>, vector<64x256xf32> -> vector<64x256xf32>
    %154 = arith.truncf %153 : vector<64x256xf32> to vector<64x256xbf16>
    %c0_88 = arith.constant 0 : index
    %c0_89 = arith.constant 0 : index
    %155 = vector.load %arg14[%c0_88, %c0_89] : memref<64x256xbf16, #tpu.memory_space<vmem>>, vector<64x256xbf16>
    %156 = arith.addf %154, %155 : vector<64x256xbf16>
    %157 = arith.index_cast %150 : i32 to index
    %c0_90 = arith.constant 0 : index
    %c0_91 = arith.constant 0 : index
    %158 = vector.load %arg7[%157, %c0_90, %c0_91] : memref<8x64x1xf32, #tpu.memory_space<vmem>>, vector<1x64x1xf32>
    %159 = vector.shape_cast %158 : vector<1x64x1xf32> to vector<64x1xf32>
    %160 = arith.truncf %159 : vector<64x1xf32> to vector<64x1xbf16>
    %161 = vector.broadcast %160 : vector<64x1xbf16> to vector<64x256xbf16>
    %162 = arith.addf %156, %161 : vector<64x256xbf16>
    %163 = math.tanh %162 : vector<64x256xbf16>
    %cst_92 = arith.constant dense<0.000000e+00> : vector<16x256xf32>
    %164 = tpu.matmul %3, %163, %cst_92 {dimension_numbers = #tpu.dot_dimension_numbers<[1], [0], [0], [1], [0, 0, 1, 1], [], []>} : vector<16x64xbf16>, vector<64x256xbf16>, vector<16x256xf32> -> vector<16x256xf32>
    %165 = vector.broadcast %4 : vector<16x1xf32> to vector<16x256xf32>
    %166 = arith.addf %164, %165 : vector<16x256xf32>
    %167 = arith.index_cast %150 : i32 to index
    %168 = memref.load %arg2[%167] : memref<8xf32, #tpu.memory_space<smem>>
    %169 = vector.broadcast %168 : f32 to vector<1x256xf32>
    %170 = arith.mulf %169, %1 : vector<1x256xf32>
    %171 = vector.broadcast %170 : vector<1x256xf32> to vector<16x256xf32>
    %172 = arith.mulf %171, %166 : vector<16x256xf32>
    %173 = arith.addf %151, %172 : vector<16x256xf32>
    %c0_93 = arith.constant 0 : index
    %c0_94 = arith.constant 0 : index
    %174 = vector.load %arg13[%c0_93, %c0_94] : memref<16x256xf32, #tpu.memory_space<vmem>>, vector<16x256xf32>
    tpu.vector_store %arg13[%c0_93, %c0_94], %173 {strides = array<i32>} : memref<16x256xf32, #tpu.memory_space<vmem>>, vector<16x256xf32>,
    %c6_i32 = arith.constant 6 : i32
    %c1_i32_95 = arith.constant 1 : i32
    %175 = arith.muli %c6_i32, %c1_i32_95 : i32
    %c0_i32_96 = arith.constant 0 : i32
    %176 = arith.addi %c0_i32_96, %175 : i32
    %c0_97 = arith.constant 0 : index
    %c0_98 = arith.constant 0 : index
    %177 = vector.load %arg13[%c0_97, %c0_98] : memref<16x256xf32, #tpu.memory_space<vmem>>, vector<16x256xf32>
    %178 = arith.truncf %177 : vector<16x256xf32> to vector<16x256xbf16>
    %cst_99 = arith.constant dense<0.000000e+00> : vector<64x256xf32>
    %179 = tpu.matmul %2, %178, %cst_99 {dimension_numbers = #tpu.dot_dimension_numbers<[1], [0], [0], [1], [0, 0, 1, 1], [], []>} : vector<64x16xbf16>, vector<16x256xbf16>, vector<64x256xf32> -> vector<64x256xf32>
    %180 = arith.truncf %179 : vector<64x256xf32> to vector<64x256xbf16>
    %c0_100 = arith.constant 0 : index
    %c0_101 = arith.constant 0 : index
    %181 = vector.load %arg14[%c0_100, %c0_101] : memref<64x256xbf16, #tpu.memory_space<vmem>>, vector<64x256xbf16>
    %182 = arith.addf %180, %181 : vector<64x256xbf16>
    %183 = arith.index_cast %176 : i32 to index
    %c0_102 = arith.constant 0 : index
    %c0_103 = arith.constant 0 : index
    %184 = vector.load %arg7[%183, %c0_102, %c0_103] : memref<8x64x1xf32, #tpu.memory_space<vmem>>, vector<1x64x1xf32>
    %185 = vector.shape_cast %184 : vector<1x64x1xf32> to vector<64x1xf32>
    %186 = arith.truncf %185 : vector<64x1xf32> to vector<64x1xbf16>
    %187 = vector.broadcast %186 : vector<64x1xbf16> to vector<64x256xbf16>
    %188 = arith.addf %182, %187 : vector<64x256xbf16>
    %189 = math.tanh %188 : vector<64x256xbf16>
    %cst_104 = arith.constant dense<0.000000e+00> : vector<16x256xf32>
    %190 = tpu.matmul %3, %189, %cst_104 {dimension_numbers = #tpu.dot_dimension_numbers<[1], [0], [0], [1], [0, 0, 1, 1], [], []>} : vector<16x64xbf16>, vector<64x256xbf16>, vector<16x256xf32> -> vector<16x256xf32>
    %191 = vector.broadcast %4 : vector<16x1xf32> to vector<16x256xf32>
    %192 = arith.addf %190, %191 : vector<16x256xf32>
    %193 = arith.index_cast %176 : i32 to index
    %194 = memref.load %arg2[%193] : memref<8xf32, #tpu.memory_space<smem>>
    %195 = vector.broadcast %194 : f32 to vector<1x256xf32>
    %196 = arith.mulf %195, %1 : vector<1x256xf32>
    %197 = vector.broadcast %196 : vector<1x256xf32> to vector<16x256xf32>
    %198 = arith.mulf %197, %192 : vector<16x256xf32>
    %199 = arith.addf %177, %198 : vector<16x256xf32>
    %c0_105 = arith.constant 0 : index
    %c0_106 = arith.constant 0 : index
    %200 = vector.load %arg13[%c0_105, %c0_106] : memref<16x256xf32, #tpu.memory_space<vmem>>, vector<16x256xf32>
    tpu.vector_store %arg13[%c0_105, %c0_106], %199 {strides = array<i32>} : memref<16x256xf32, #tpu.memory_space<vmem>>, vector<16x256xf32>,
    %c7_i32 = arith.constant 7 : i32
    %c1_i32_107 = arith.constant 1 : i32
    %201 = arith.muli %c7_i32, %c1_i32_107 : i32
    %c0_i32_108 = arith.constant 0 : i32
    %202 = arith.addi %c0_i32_108, %201 : i32
    %c0_109 = arith.constant 0 : index
    %c0_110 = arith.constant 0 : index
    %203 = vector.load %arg13[%c0_109, %c0_110] : memref<16x256xf32, #tpu.memory_space<vmem>>, vector<16x256xf32>
    %204 = arith.truncf %203 : vector<16x256xf32> to vector<16x256xbf16>
    %cst_111 = arith.constant dense<0.000000e+00> : vector<64x256xf32>
    %205 = tpu.matmul %2, %204, %cst_111 {dimension_numbers = #tpu.dot_dimension_numbers<[1], [0], [0], [1], [0, 0, 1, 1], [], []>} : vector<64x16xbf16>, vector<16x256xbf16>, vector<64x256xf32> -> vector<64x256xf32>
    %206 = arith.truncf %205 : vector<64x256xf32> to vector<64x256xbf16>
    %c0_112 = arith.constant 0 : index
    %c0_113 = arith.constant 0 : index
    %207 = vector.load %arg14[%c0_112, %c0_113] : memref<64x256xbf16, #tpu.memory_space<vmem>>, vector<64x256xbf16>
    %208 = arith.addf %206, %207 : vector<64x256xbf16>
    %209 = arith.index_cast %202 : i32 to index
    %c0_114 = arith.constant 0 : index
    %c0_115 = arith.constant 0 : index
    %210 = vector.load %arg7[%209, %c0_114, %c0_115] : memref<8x64x1xf32, #tpu.memory_space<vmem>>, vector<1x64x1xf32>
    %211 = vector.shape_cast %210 : vector<1x64x1xf32> to vector<64x1xf32>
    %212 = arith.truncf %211 : vector<64x1xf32> to vector<64x1xbf16>
    %213 = vector.broadcast %212 : vector<64x1xbf16> to vector<64x256xbf16>
    %214 = arith.addf %208, %213 : vector<64x256xbf16>
    %215 = math.tanh %214 : vector<64x256xbf16>
    %cst_116 = arith.constant dense<0.000000e+00> : vector<16x256xf32>
    %216 = tpu.matmul %3, %215, %cst_116 {dimension_numbers = #tpu.dot_dimension_numbers<[1], [0], [0], [1], [0, 0, 1, 1], [], []>} : vector<16x64xbf16>, vector<64x256xbf16>, vector<16x256xf32> -> vector<16x256xf32>
    %217 = vector.broadcast %4 : vector<16x1xf32> to vector<16x256xf32>
    %218 = arith.addf %216, %217 : vector<16x256xf32>
    %219 = arith.index_cast %202 : i32 to index
    %220 = memref.load %arg2[%219] : memref<8xf32, #tpu.memory_space<smem>>
    %221 = vector.broadcast %220 : f32 to vector<1x256xf32>
    %222 = arith.mulf %221, %1 : vector<1x256xf32>
    %223 = vector.broadcast %222 : vector<1x256xf32> to vector<16x256xf32>
    %224 = arith.mulf %223, %218 : vector<16x256xf32>
    %225 = arith.addf %203, %224 : vector<16x256xf32>
    %c0_117 = arith.constant 0 : index
    %c0_118 = arith.constant 0 : index
    %226 = vector.load %arg13[%c0_117, %c0_118] : memref<16x256xf32, #tpu.memory_space<vmem>>, vector<16x256xf32>
    tpu.vector_store %arg13[%c0_117, %c0_118], %225 {strides = array<i32>} : memref<16x256xf32, #tpu.memory_space<vmem>>, vector<16x256xf32>,
    %c8_i32 = arith.constant 8 : i32
    %c0_119 = arith.constant 0 : index
    %c0_120 = arith.constant 0 : index
    %227 = vector.load %arg13[%c0_119, %c0_120] : memref<16x256xf32, #tpu.memory_space<vmem>>, vector<16x256xf32>
    %c0_121 = arith.constant 0 : index
    %c0_122 = arith.constant 0 : index
    %c0_123 = arith.constant 0 : index
    %228 = vector.load %arg12[%c0_121, %c0_122, %c0_123] : memref<1x16x256xf32, #tpu.memory_space<vmem>>, vector<1x16x256xf32>
    %229 = vector.shape_cast %228 : vector<1x16x256xf32> to vector<16x256xf32>
    %230 = vector.shape_cast %227 : vector<16x256xf32> to vector<1x16x256xf32>
    tpu.vector_store %arg12[%c0_121, %c0_122, %c0_123], %230 {strides = array<i32>} : memref<1x16x256xf32, #tpu.memory_space<vmem>>, vector<1x16x256xf32>,
    return
  }
  func.func @transform_0(%arg0: i32, %arg1: i32) -> i32 {
    %c0_i32 = arith.constant 0 : i32
    %c0_i32_0 = arith.constant 0 : i32
    return %c0_i32 : i32
  }
  func.func @transform_1(%arg0: i32, %arg1: i32) -> (i32, i32, i32) {
    %c0_i32 = arith.constant 0 : i32
    %c0_i32_0 = arith.constant 0 : i32
    return %arg0, %c0_i32, %arg1 : i32, i32, i32
  }
  func.func @transform_2(%arg0: i32, %arg1: i32) -> (i32, i32, i32) {
    %c0_i32 = arith.constant 0 : i32
    %c0_i32_0 = arith.constant 0 : i32
    return %arg0, %c0_i32, %arg1 : i32, i32, i32
  }
  func.func @transform_3(%arg0: i32, %arg1: i32) -> (i32, i32, i32) {
    %c0_i32 = arith.constant 0 : i32
    %c0_i32_0 = arith.constant 0 : i32
    return %arg0, %c0_i32, %arg1 : i32, i32, i32
  }
  func.func @transform_4(%arg0: i32, %arg1: i32) -> (i32, i32, i32) {
    %c0_i32 = arith.constant 0 : i32
    %c0_i32_0 = arith.constant 0 : i32
    %c0_i32_1 = arith.constant 0 : i32
    return %arg0, %c0_i32, %c0_i32_0 : i32, i32, i32
  }
  func.func @transform_5(%arg0: i32, %arg1: i32) -> (i32, i32, i32) {
    %c0_i32 = arith.constant 0 : i32
    %c0_i32_0 = arith.constant 0 : i32
    %c0_i32_1 = arith.constant 0 : i32
    %c0_i32_2 = arith.constant 0 : i32
    return %c0_i32, %c0_i32_0, %c0_i32_1 : i32, i32, i32
  }
  func.func @transform_6(%arg0: i32, %arg1: i32) -> (i32, i32) {
    %c0_i32 = arith.constant 0 : i32
    %c0_i32_0 = arith.constant 0 : i32
    %c0_i32_1 = arith.constant 0 : i32
    return %c0_i32, %c0_i32_0 : i32, i32
  }
  func.func @transform_7(%arg0: i32, %arg1: i32) -> (i32, i32) {
    %c0_i32 = arith.constant 0 : i32
    %c0_i32_0 = arith.constant 0 : i32
    %c0_i32_1 = arith.constant 0 : i32
    return %c0_i32, %c0_i32_0 : i32, i32
  }
  func.func @transform_8(%arg0: i32, %arg1: i32) -> (i32, i32) {
    %c0_i32 = arith.constant 0 : i32
    %c0_i32_0 = arith.constant 0 : i32
    %c0_i32_1 = arith.constant 0 : i32
    return %c0_i32, %c0_i32_0 : i32, i32
  }
  func.func @transform_9(%arg0: i32, %arg1: i32) -> (i32, i32) {
    %c0_i32 = arith.constant 0 : i32
    %c0_i32_0 = arith.constant 0 : i32
    %c0_i32_1 = arith.constant 0 : i32
    return %c0_i32, %c0_i32_0 : i32, i32
  }
  func.func @transform_10(%arg0: i32, %arg1: i32) -> (i32, i32, i32) {
    %c0_i32 = arith.constant 0 : i32
    %c0_i32_0 = arith.constant 0 : i32
    return %arg0, %c0_i32, %arg1 : i32, i32, i32
  }
}

</mosaic_0001>

<bundles_post_ra>
// kernel: _cfm_solve.1
= control target key start
LH: loop header
LB: loop body
LE: loop exit
PB: predicated region body
PF: predicated region fallthrough
CT: control target
= control target key end

     0   :  { %s4491_s0 = inlined_call_operand.vmem [shape: f32[8], index: 0, kind: input, shape index: {}]   ;;  %s4492_s1 = inlined_call_operand.vmem [shape: f32[2,16,256], index: 1, kind: input, shape index: {}]   ;;  %s4493_s2 = inlined_call_operand.vmem [shape: f32[2,16,256], index: 2, kind: input, shape index: {}]   ;;  %s4494_s3 = inlined_call_operand.vmem [shape: f32[2,1,256], index: 3, kind: input, shape index: {}]   ;;  %s4495_s4 = inlined_call_operand.vmem [shape: f32[2,64,1], index: 4, kind: input, shape index: {}]   ;;  %s4496_s5 = inlined_call_operand.vmem [shape: f32[8,64,1], index: 5, kind: input, shape index: {}]   ;;  %s4497_s6 = inlined_call_operand.vmem [shape: bf16[64,16], index: 6, kind: input, shape index: {}]   ;;  %s4498_s7 = inlined_call_operand.vmem [shape: bf16[64,16], index: 7, kind: input, shape index: {}]   ;;  %s4499_s8 = inlined_call_operand.vmem [shape: bf16[16,64], index: 8, kind: input, shape index: {}]   ;;  %s4500_s9 = inlined_call_operand.vmem [shape: f32[16,1], index: 9, kind: input, shape index: {}]   ;;  %s4501_s10 = inlined_call_operand.hbm [shape: f32[2,16,256], index: 10, kind: output, shape index: {}]  }
   0x1   :  { %4503 = sst [smem:[#allocation11_spill]] %s4491_s0 }
   0x2   :  { %4504 = sst [smem:[#allocation12_spill]] %s4492_s1 }
   0x3   :  { %15 = vsyncpa [#allocation6], 0 }
   0x4   :  { %16 = vsyncpa [#allocation5], 0 }
   0x5   :  { %18 = vsyncpa [#allocation5 + $0x1], 0  ;;  %s3635_s13 = smov 0   ;;  %s3637_s14 = smov 0  }
   0x6   :  { %s3639_s15 = smov 0   ;;  %s3641_s16 = smov 0  }
   0x7   :  { %s3643_s17 = smov 0   ;;  %s3645_s18 = smov 0  }
   0x8 LB: > { %s3036_s19 = sadd.s32 4294967295, %s3573_s18   ;;  %s3037_s20 = sadd.s32 4294967294, %s3573_s18   ;;  %s3573_s18 = sphi %s3645_s18, %s24_s18   ;;  %s3569_s17 = sphi %s3643_s17, %s4517_s17   ;;  %s3565_s16 = sphi %s3641_s16, %s4516_s16   ;;  %s3561_s15 = sphi %s3639_s15, %s4515_s15   ;;  %s3557_s14 = sphi %s3637_s14, %s4514_s14   ;;  %s3553_s13 = sphi %s3635_s13, %s4513_s13  }
   0x9   : > { %s36_s21 = sadd.s32 1, %s3569_s17  ;;  %s281_s22 = sadd.s32 1, %s3561_s15 }
   0xa   : > { %p38_p0 = scmp.ge.s32.totalorder %s36_s21, 2  ;;  %p291_p1 = scmp.ne.s32.totalorder %s3561_s15, %s3557_s14 }
   0xb   : > { %p292_p2 = scmp.eq.s32.totalorder %s3036_s19, 1  ;;  %p297_p3 = scmp.ne.s32.totalorder %s3557_s14, %s3553_s13 }
   0xc   : > { %s4519_s21 = smov (%p38_p0, %s36_s21), 0  ;;  %p298_p5 = scmp.eq.s32.totalorder %s3037_s20, 1 }
   0xd   : > { %4505 = sst [smem:[#allocation10_spill]] %s4519_s21  ;;  %p3675_p4 = por %p292_p2, %p291_p1 }
   0xe   : > { %s276_s24 = ssub.s32 %s3569_s17, %s4519_s21  ;;  %p3038_p6 = scmp.ge.s32.totalorder %s3573_s18, 1 }
   0xf   : > { %p279_p7 = scmp.eq.s32.totalorder %s276_s24, 0  ;;  %p3682_p8 = por %p298_p5, %p297_p3 }
  0x10   : > { %p305_p9 = scmp.lt.s32.totalorder %s3573_s18, 3  ;;  %p3694_p11 = scmp.eq.s32.totalorder %s3036_s19, 0 }
  0x11   : > { %s3688_s26 = scalar_select %p279_p7, %s3561_s15, %s281_s22  }
  0x12   : > { %p3690_p10 = pnand %p3038_p6, %p305_p9  ;;  %s4510_s0 = sld [smem:[#allocation11_spill]] }
  0x14   : > { %p3270_p12 = pneg %p3690_p10 }
  0x16   : > { %p3271_p13 = pnand %p3694_p11, %p3270_p12 }
  0x18   : > { %s318_s11 = sshll.u32 %s4510_s0, 4  ;;  %p3480_p1 = pneg %p3271_p13  ;;  %s319_s11 = int_to_ptr.vmem [resolvable:$true] %s318_s11 }
  0x19   : > { %s3478_s12 = scalar_lea.vmem %s319_s11, 16  ;;  %p3486_p5 = scmp.lt.s32.totalorder %s319_s11, %s319_s11 }
  0x1a   : > { %p3479_p0 = scmp.ne.s32.totalorder %s319_s11, %s3478_s12  ;;  %p3487_p6 = scmp.lt.s32.totalorder %s3478_s12, %s3478_s12 }
  0x1c   : > { %p3481_p2 = pnand %p3480_p1, %p3479_p0  ;;  %p3488_p7 = por %p3487_p6, %p3486_p5 }
  0x1e   : > { %p3482_p3 = pneg %p3481_p2 }
  0x20   : > { %p3489_p9 = pnand %p3488_p7, %p3482_p3 }
  0x22   : > { %3492 = shalt.err (!%p3489_p9)
}
  0x23   : > { %s3575_s19 = smov [#allocation4]   ;;  %392 = sbr.rel (%p3690_p10) target bundleno = 3835 (0xefb), region = 60 }
  0x24   : > { %3273 = dma.vmem_to_smem (!%p3271_p13), %s319_s11, 16, %s3575_s19, [#allocation6]  }
  0x28   : > { %3544 = dma.done.wait (%p3694_p11), [#allocation6], 16  }
  0x29   : > { %3546 = vsyncadd (%p3694_p11), [#allocation6], 4294967280 }
  0x2a   : > { %398 = sfence }
  0x2b   : > { %p458_p12 = scmp.lt.s32.totalorder %s3565_s16, 1  ;;  %v3576_v0 = vmov 0   ;;  %s4511_s1 = sld [smem:[#allocation12_spill]]  ;;  %v3335_v15 = vld [vmem:[%s4498_s7] sm:$0xff]   ;;  %vm588_vm0 = vcmask 130048   ;;  %v919_v19 = vld [vmem:[%s4496_s5 + $0x30] sm:$0xff] }
  0x2c   : > { %633 = vmatprep.mubr.bf16.mxu0 %v3576_v0  ;;  %808 = vmatprep.mubr.bf16.mxu1 %v3576_v0  ;;  %v3752_v16 = vld [vmem:[%s4497_s6] sm:$0xff]   ;;  %v920_v20 = vld [vmem:[%s4496_s5 + $0x38] sm:$0xff]  ;;  %v918_v24 = vld [vmem:[%s4496_s5 + $0x28] sm:$0xff]  ;;  %vm976_vm1 = vcmask 523264   ;;  %s3128_s24 = sld [smem:[#allocation4 + $0x2]] }
  0x2d   : > { %s3715_s20 = scalar_select %p458_p12, %s3565_s16, 1  ;;  %3333 = vset.pattern.permute.xlu0 %v3576_v0  ;;  %3334 = vset.pattern.permute.xlu1 %v3576_v0  ;;  %v924_v21 = vpack.c.bf16 %v920_v20, %v919_v19  ;;  %v917_v23 = vld [vmem:[%s4496_s5 + $0x20] sm:$0xff]  ;;  %v3337_v25 = vld [vmem:[%s4498_s7 + $0x8] sm:$0xff]   ;;  %v915_v31 = vld [vmem:[%s4496_s5 + $0x10] sm:$0xff] }
  0x2e   : > { %v3780_v26 = vld [vmem:[%s4497_s6 + $0x8] sm:$0xff]   ;;  %v923_v27 = vpack.c.bf16 %v918_v24, %v917_v23  ;;  %v916_v32 = vld [vmem:[%s4496_s5 + $0x18] sm:$0xff]  ;;  %v913_v33 = vld [vmem:[%s4496_s5] sm:$0xff]  ;;  %s3150_s30 = sld [smem:[#allocation4 + $0x3]] }
  0x2f   : > { %s3244_s22 = sshll.u32 %s3715_s20, 5  ;;  %s3246_s29 = sshll.u32 %s3715_s20, 6  ;;  %v914_v34 = vld [vmem:[%s4496_s5 + $0x8] sm:$0xff]  ;;  %v3339_v35 = vld [vmem:[%s4498_s7 + $0x10] sm:$0xff]   ;;  %v922_v37 = vpack.c.bf16 %v916_v32, %v915_v31  ;;  %v504_v39 = vld [vmem:[%s4500_s9] sm:$0xff] }
  0x30   : > { %s475_s28 = scalar_lea.vmem %s4493_s2, %s3244_s22  ;;  %s3730_s21 = scalar_lea.vmem %s4495_s4, %s3246_s29  ;;  %v3808_v36 = vld [vmem:[%s4497_s6 + $0x10] sm:$0xff]   ;;  %v921_v38 = vpack.c.bf16 %v914_v34, %v913_v33  ;;  %v505_v40 = vld [vmem:[%s4500_s9 + $0x8] sm:$0xff]  ;;  %v3104_v42 = vld [vmem:[%s4496_s5 + $0x78] sm:$0xff] }
  0x31   : > { %v515_v1 = vld [vmem:[%s475_s28 + $0x8] sm:$0xff]  ;;  %v517_v2 = vld [vmem:[%s475_s28 + $0x18] sm:$0xff]  ;;  %s465_s12 = scalar_lea.vmem %s4511_s1, %s3244_s22  ;;  %v514_v6 = vld [vmem:[%s475_s28] sm:$0xff]  ;;  %s1023_s1 = sld [smem:[#allocation4]] }
  0x32   : > { %v519_v3 = vpack.c.bf16 %v517_v2, %v515_v1  ;;  %v3732_v4 = vld [vmem:[%s465_s12 + $0x8] sm:$0xff]  ;;  %v3734_v5 = vld [vmem:[%s465_s12 + $0x18] sm:$0xff]  ;;  %v516_v8 = vld [vmem:[%s475_s28 + $0x10] sm:$0xff]  ;;  %s3172_s0 = sld [smem:[#allocation4 + $0x4]]  ;;  %s454_s29 = sand.u32 1, %s3557_s14  }
  0x33   : > { %v743_v7 = vpack.c.bf16 %v3734_v5, %v3732_v4  ;;  %v3738_v9 = vld [vmem:[%s465_s12] sm:$0xff]  ;;  %v3740_v10 = vld [vmem:[%s465_s12 + $0x10] sm:$0xff]  ;;  %v518_v11 = vpack.c.bf16 %v516_v8, %v514_v6  ;;  %v527_v17 = vld [vmem:[%s3730_s21 + $0x38] sm:$0xff]  ;;  %s3048_s12 = sshll.u32 %s3715_s20, 1  ;;  %s3106_s20 = sld [smem:[#allocation4 + $0x1]] }
  0x34   : > { %615 = vmatprep.subr.bf16.mxu0 %v519_v3  ;;  %v742_v12 = vpack.c.bf16 %v3740_v10, %v3738_v9  ;;  %v526_v13 = vld [vmem:[%s3730_s21 + $0x30] sm:$0xff]  ;;  %v524_v14 = vld [vmem:[%s3730_s21 + $0x20] sm:$0xff]  ;;  %v525_v18 = vld [vmem:[%s3730_s21 + $0x28] sm:$0xff]  ;;  %s4065_s22 = scalar_lea.vmem %s4494_s3, %s3048_s12  ;;  %s3194_s27 = sld [smem:[#allocation4 + $0x5]] }
  0x35   : > { %790 = vmatprep.subr.bf16.mxu1 %v743_v7  ;;  %560 = vperm.xlu0 %3333, %v526_v13   ;;  %v522_v22 = vld [vmem:[%s3730_s21 + $0x10] sm:$0xff]  ;;  %v523_v28 = vld [vmem:[%s3730_s21 + $0x18] sm:$0xff]  ;;  %v520_v29 = vld [vmem:[%s3730_s21] sm:$0xff]  ;;  %s3238_s28 = sld [smem:[#allocation4 + $0x7]] }
  0x36   : > { %616 = vmatpush1.bf16.msra.mxu0 %v518_v11  ;;  %791 = vmatpush1.bf16.msra.mxu1 %v742_v12  ;;  %v521_v30 = vld [vmem:[%s3730_s21 + $0x8] sm:$0xff]  ;;  %v3103_v41 = vld [vmem:[%s4496_s5 + $0x70] sm:$0xff]  ;;  %v3101_v43 = vld [vmem:[%s4496_s5 + $0x60] sm:$0xff]  ;;  %s3043_s21 = sshll.u32 %s454_s29, 5 }
  0x37   : > { %550 = vperm.xlu1 %3334, %v524_v14   ;;  %v3102_v44 = vld [vmem:[%s4496_s5 + $0x68] sm:$0xff]  ;;  %v3341_v45 = vld [vmem:[%s4498_s7 + $0x18] sm:$0xff]   ;;  %v1204_v47 = vpack.c.bf16 %v3104_v42, %v3103_v41  ;;  %v3099_v49 = vld [vmem:[%s4496_s5 + $0x50] sm:$0xff] }
  0x38   : > { %v3839_v46 = vld [vmem:[%s4497_s6 + $0x18] sm:$0xff]   ;;  %v1203_v48 = vpack.c.bf16 %v3102_v44, %v3101_v43  ;;  %v3097_v51 = vld [vmem:[%s4496_s5 + $0x40] sm:$0xff]  ;;  %v3098_v52 = vld [vmem:[%s4496_s5 + $0x48] sm:$0xff] }
  0x39   : > { %3055 = vmatmul.mubr.msk.bf16.vlgmr.msra.gmra.mxu0 %vm588_vm0, %v3335_v15  ;;  %3071 = vmatmul.mubr.msk.bf16.vlgmr.msra.gmra.mxu1 %vm588_vm0, %v3752_v16  ;;  %v3100_v50 = vld [vmem:[%s4496_s5 + $0x58] sm:$0xff]  ;;  %v1201_v54 = vpack.c.bf16 %v3098_v52, %v3097_v51  ;;  %v3125_v55 = vld [vmem:[%s4496_s5 + $0xb0] sm:$0xff]  ;;  %v3123_v57 = vld [vmem:[%s4496_s5 + $0xa0] sm:$0xff] }
  0x3a   : > { %643 = vmatprep.mubr.bf16.mxu0 %v3576_v0  ;;  %818 = vmatprep.mubr.bf16.mxu1 %v3576_v0  ;;  %v1202_v53 = vpack.c.bf16 %v3100_v50, %v3099_v49  ;;  %v3126_v56 = vld [vmem:[%s4496_s5 + $0xb8] sm:$0xff]  ;;  %v3124_v58 = vld [vmem:[%s4496_s5 + $0xa8] sm:$0xff]  ;;  %v3121_v61 = vld [vmem:[%s4496_s5 + $0x90] sm:$0xff] }
  0x3b   : > { %565 = vperm.xlu0 %3333, %v527_v17   ;;  %555 = vperm.xlu1 %3334, %v525_v18   ;;  %v1465_v59 = vpack.c.bf16 %v3126_v56, %v3125_v55  ;;  %v1464_v60 = vpack.c.bf16 %v3124_v58, %v3123_v57  ;;  %v3122_v62 = vld [vmem:[%s4496_s5 + $0x98] sm:$0xff]  ;;  %v3119_v63 = vld [vmem:[%s4496_s5 + $0x80] sm:$0xff]  ;;  %v3120_v1 = vld [vmem:[%s4496_s5 + $0x88] sm:$0xff] }
  0x3c   : > { %v1463_v2 = vpack.c.bf16 %v3122_v62, %v3121_v61  ;;  %v1462_v3 = vpack.c.bf16 %v3120_v1, %v3119_v63  ;;  %v3147_v6 = vld [vmem:[%s4496_s5 + $0xf0] sm:$0xff]  ;;  %v3148_v7 = vld [vmem:[%s4496_s5 + $0xf8] sm:$0xff]  ;;  %v3145_v8 = vld [vmem:[%s4496_s5 + $0xe0] sm:$0xff] }
  0x3d   : > { %v3146_v11 = vld [vmem:[%s4496_s5 + $0xe8] sm:$0xff]  ;;  %v1726_v12 = vpack.c.bf16 %v3148_v7, %v3147_v6  ;;  %v3143_v14 = vld [vmem:[%s4496_s5 + $0xd0] sm:$0xff]  ;;  %v3144_v15 = vld [vmem:[%s4496_s5 + $0xd8] sm:$0xff] }
  0x3e   : > { %v1725_v13 = vpack.c.bf16 %v3146_v11, %v3145_v8  ;;  %v3141_v17 = vld [vmem:[%s4496_s5 + $0xc0] sm:$0xff]  ;;  %v3142_v18 = vld [vmem:[%s4496_s5 + $0xc8] sm:$0xff]  ;;  %v1724_v19 = vpack.c.bf16 %v3144_v15, %v3143_v14  ;;  %v3191_v34 = vld [vmem:[%s4496_s5 + $0x170] sm:$0xff] }
  0x3f   : > { %942 = vperm.xlu0 %3333, %v924_v21   ;;  %540 = vperm.xlu1 %3334, %v522_v22   ;;  %v1723_v20 = vpack.c.bf16 %v3142_v18, %v3141_v17  ;;  %v3169_v21 = vld [vmem:[%s4496_s5 + $0x130] sm:$0xff]  ;;  %v3170_v22 = vld [vmem:[%s4496_s5 + $0x138] sm:$0xff]  ;;  %v3167_v23 = vld [vmem:[%s4496_s5 + $0x120] sm:$0xff] }
  0x40   : > { %v3168_v24 = vld [vmem:[%s4496_s5 + $0x128] sm:$0xff]  ;;  %v3187_v41 = vld [vmem:[%s4496_s5 + $0x150] sm:$0xff]  ;;  %v3188_v42 = vld [vmem:[%s4496_s5 + $0x158] sm:$0xff] }
  0x41   : > { %3056 = vmatmul.mubr.msk.bf16.gmra.mxu0 %vm588_vm0, %v3337_v25  ;;  %3072 = vmatmul.mubr.msk.bf16.gmra.mxu1 %vm588_vm0, %v3780_v26  ;;  %v1987_v25 = vpack.c.bf16 %v3170_v22, %v3169_v21  ;;  %v3164_v31 = vld [vmem:[%s4496_s5 + $0x108] sm:$0xff]  ;;  %v3185_v43 = vld [vmem:[%s4496_s5 + $0x140] sm:$0xff]  ;;  %v3214_v49 = vld [vmem:[%s4496_s5 + $0x1b8] sm:$0xff] }
  0x42   : > { %653 = vmatprep.mubr.bf16.mxu0 %v3576_v0  ;;  %828 = vmatprep.mubr.bf16.mxu1 %v3576_v0  ;;  %v3186_v44 = vld [vmem:[%s4496_s5 + $0x148] sm:$0xff]  ;;  %v3211_v50 = vld [vmem:[%s4496_s5 + $0x1a0] sm:$0xff]  ;;  %v3210_v55 = vld [vmem:[%s4496_s5 + $0x198] sm:$0xff] }
  0x43   : > { %545 = vperm.xlu0 %3333, %v523_v28   ;;  %937 = vperm.xlu1 %3334, %v923_v27   ;;  %v1986_v27 = vpack.c.bf16 %v3168_v24, %v3167_v23  ;;  %v3165_v28 = vld [vmem:[%s4496_s5 + $0x110] sm:$0xff]  ;;  %v3212_v51 = vld [vmem:[%s4496_s5 + $0x1a8] sm:$0xff]  ;;  %v3207_v56 = vld [vmem:[%s4496_s5 + $0x180] sm:$0xff] }
  0x44   : > { %v3208_v57 = vld [vmem:[%s4496_s5 + $0x188] sm:$0xff]  ;;  %v3236_v61 = vld [vmem:[%s4496_s5 + $0x1f8] sm:$0xff]  ;;  %v3233_v62 = vld [vmem:[%s4496_s5 + $0x1e0] sm:$0xff] }
  0x45   : > { %v3234_v63 = vld [vmem:[%s4496_s5 + $0x1e8] sm:$0xff]  ;;  %v3232_v6 = vld [vmem:[%s4496_s5 + $0x1d8] sm:$0xff]  ;;  %v3229_v7 = vld [vmem:[%s4496_s5 + $0x1c0] sm:$0xff] }
  0x46   : > { %v3230_v8 = vld [vmem:[%s4496_s5 + $0x1c8] sm:$0xff] }
  0x47   : > { %530 = vperm.xlu0 %3333, %v520_v29   ;;  %535 = vperm.xlu1 %3334, %v521_v30   ;;  %v3166_v29 = vld [vmem:[%s4496_s5 + $0x118] sm:$0xff]  ;;  %v3163_v30 = vld [vmem:[%s4496_s5 + $0x100] sm:$0xff] }
  0x48   : > { %v1985_v32 = vpack.c.bf16 %v3166_v29, %v3165_v28  ;;  %v1984_v33 = vpack.c.bf16 %v3164_v31, %v3163_v30 }
  0x49   : > { %3057 = vmatmul.mubr.msk.bf16.gmra.mxu0 %vm588_vm0, %v3339_v35  ;;  %3073 = vmatmul.mubr.msk.bf16.gmra.mxu1 %vm588_vm0, %v3808_v36  ;;  %v3192_v35 = vld [vmem:[%s4496_s5 + $0x178] sm:$0xff] }
  0x4a   : > { %663 = vmatprep.mubr.bf16.mxu0 %v3576_v0  ;;  %838 = vmatprep.mubr.bf16.mxu1 %v3576_v0 }
  0x4b   : > { %932 = vperm.xlu0 %3333, %v922_v37   ;;  %927 = vperm.xlu1 %3334, %v921_v38   ;;  %v3189_v37 = vld [vmem:[%s4496_s5 + $0x160] sm:$0xff]  ;;  %v3190_v38 = vld [vmem:[%s4496_s5 + $0x168] sm:$0xff] }
  0x4f   : > { %963 = vperm.xlu0 %3333, %v504_v39   ;;  %968 = vperm.xlu1 %3334, %v505_v40   ;;  %v2248_v39 = vpack.c.bf16 %v3192_v35, %v3191_v34  ;;  %v2247_v40 = vpack.c.bf16 %v3190_v38, %v3189_v37 }
  0x51   : > { %3058 = vmatmul.mubr.msk.bf16.gmra.mxu0 %vm588_vm0, %v3341_v45  ;;  %3074 = vmatmul.mubr.msk.bf16.gmra.mxu1 %vm588_vm0, %v3839_v46  ;;  %v2246_v45 = vpack.c.bf16 %v3188_v42, %v3187_v41 }
  0x52   : > { %1012 = vmatprep.mubr.bf16.mxu0 %v3576_v0  ;;  %1087 = vmatprep.mubr.bf16.mxu1 %v3576_v0 }
  0x53   : > { %1222 = vperm.xlu0 %3333, %v1204_v47   ;;  %1217 = vperm.xlu1 %3334, %v1203_v48   ;;  %v2245_v47 = vpack.c.bf16 %v3186_v44, %v3185_v43  ;;  %v3213_v48 = vld [vmem:[%s4496_s5 + $0x1b0] sm:$0xff] }
  0x54   : > { %v2509_v52 = vpack.c.bf16 %v3214_v49, %v3213_v48 }
  0x57   : > { %1212 = vperm.xlu0 %3333, %v1202_v53   ;;  %1207 = vperm.xlu1 %3334, %v1201_v54   ;;  %v2508_v53 = vpack.c.bf16 %v3212_v51, %v3211_v50  ;;  %v3209_v54 = vld [vmem:[%s4496_s5 + $0x190] sm:$0xff] }
  0x58   : > { %v2507_v58 = vpack.c.bf16 %v3210_v55, %v3209_v54 }
  0x5b   : > { %1483 = vperm.xlu0 %3333, %v1465_v59   ;;  %1478 = vperm.xlu1 %3334, %v1464_v60   ;;  %v2506_v59 = vpack.c.bf16 %v3208_v57, %v3207_v56  ;;  %v3235_v60 = vld [vmem:[%s4496_s5 + $0x1f0] sm:$0xff] }
  0x5c   : > { %v2770_v1 = vpack.c.bf16 %v3236_v61, %v3235_v60 }
  0x5f   : > { %1473 = vperm.xlu0 %3333, %v1463_v2   ;;  %1468 = vperm.xlu1 %3334, %v1462_v3   ;;  %v2769_v2 = vpack.c.bf16 %v3234_v63, %v3233_v62  ;;  %v3231_v3 = vld [vmem:[%s4496_s5 + $0x1d0] sm:$0xff] }
  0x60   : > { %v2768_v11 = vpack.c.bf16 %v3232_v6, %v3231_v3 }
  0x63   : > { %1744 = vperm.xlu0 %3333, %v1726_v12   ;;  %1739 = vperm.xlu1 %3334, %v1725_v13   ;;  %v2767_v12 = vpack.c.bf16 %v3230_v8, %v3229_v7 }
  0x67   : > { %1734 = vperm.xlu0 %3333, %v1724_v19   ;;  %1729 = vperm.xlu1 %3334, %v1723_v20  }
  0x6b   : > { %2005 = vperm.xlu0 %3333, %v1987_v25   ;;  %2000 = vperm.xlu1 %3334, %v1986_v27  }
  0x6f   : > { %1995 = vperm.xlu0 %3333, %v1985_v32   ;;  %1990 = vperm.xlu1 %3334, %v1984_v33  }
  0x73   : > { %2266 = vperm.xlu0 %3333, %v2248_v39   ;;  %2261 = vperm.xlu1 %3334, %v2247_v40  }
  0x77   : > { %2256 = vperm.xlu0 %3333, %v2246_v45   ;;  %2251 = vperm.xlu1 %3334, %v2245_v47  }
  0x7b   : > { %2527 = vperm.xlu0 %3333, %v2509_v52   ;;  %2522 = vperm.xlu1 %3334, %v2508_v53  }
  0x7f   : > { %2517 = vperm.xlu0 %3333, %v2507_v58   ;;  %2512 = vperm.xlu1 %3334, %v2506_v59  }
  0x83   : > { %2788 = vperm.xlu0 %3333, %v2770_v1   ;;  %2783 = vperm.xlu1 %3334, %v2769_v2  }
  0x87   : > { %2778 = vperm.xlu0 %3333, %v2768_v11   ;;  %2773 = vperm.xlu1 %3334, %v2767_v12  }
  0xb0   : > { %v561_v25 = vpop.permute.xlu0 %560 }
  0xb2   : > { %v551_v22 = vpop.permute.xlu1 %550 }
  0xb6   : > { %v556_v31 = vpop.permute.xlu1 %555  ;;  %v566_v34 = vpop.permute.xlu0 %565 }
  0xba   : > { %v541_v40 = vpop.permute.xlu1 %540  ;;  %v943_v43 = vpop.permute.xlu0 %942 }
  0xbe   : > { %v938_v49 = vpop.permute.xlu1 %937  ;;  %v546_v53 = vpop.permute.xlu0 %545 }
  0xc2   : > { %v536_v6 = vpop.permute.xlu1 %535 }
  0xf9   : > { %v4002_v13 = vpop.f32.mrf.mxu0  ;;  %v4004_v14 = vpop.f32.mrf.mxu1 }
  0xfb   : > { %v4006_v15 = vpop.f32.mrf.mxu0  ;;  %v4008_v17 = vpop.f32.mrf.mxu1 }
  0xfd   : > { %v4010_v18 = vpop.f32.mrf.mxu0  ;;  %v4012_v19 = vpop.f32.mrf.mxu1 }
  0xff   : > { %v641_v20 = vpop.f32.mrf.mxu0  ;;  %v4014_v21 = vpop.f32.mrf.mxu1 }
 0x101   : > { %v645_v23 = vpop.f32.mrf.mxu0  ;;  %v4016_v24 = vpop.f32.mrf.mxu1 }
 0x103   : > { %v647_v27 = vpop.f32.mrf.mxu0  ;;  %v822_v28 = vpop.f32.mrf.mxu1 }
 0x104   : > { %v648_v62 = vadd.f32 %v647_v27, %v541_v40 }
 0x105   : > { %v649_v29 = vpop.f32.mrf.mxu0  ;;  %v4018_v30 = vpop.f32.mrf.mxu1 }
 0x107   : > { %v651_v32 = vpop.f32.mrf.mxu0  ;;  %v826_v33 = vpop.f32.mrf.mxu1 }
 0x108   : > { %v652_v55 = vadd.f32 %v651_v32, %v546_v53  ;;  %v650_v32 = vadd.f32 %v649_v29, %v546_v53  ;;  %v640_v29 = vadd.f32 %v4010_v18, %v536_v6 }
 0x109   : > { %v655_v35 = vpop.f32.mrf.mxu0  ;;  %v830_v37 = vpop.f32.mrf.mxu1 }
 0x10a   : > { %v656_v63 = vadd.f32 %v655_v35, %v551_v22 }
 0x10b   : > { %v657_v38 = vpop.f32.mrf.mxu0  ;;  %v832_v39 = vpop.f32.mrf.mxu1 }
 0x10c   : > { %v658_v54 = vadd.f32 %v657_v38, %v551_v22  ;;  %v642_v38 = vadd.f32 %v641_v20, %v536_v6  ;;  %v1024_v6 = vstv %s1023_s1  ;;  %s3255_s1 = sshll.u32 %s3565_s16, 9 }
 0x10d   : > { %v659_v41 = vpop.f32.mrf.mxu0  ;;  %v834_v42 = vpop.f32.mrf.mxu1 }
 0x10e   : > { %v660_v56 = vadd.f32 %v659_v41, %v556_v31 }
 0x10f   : > { %v661_v44 = vpop.f32.mrf.mxu0  ;;  %v836_v45 = vpop.f32.mrf.mxu1 }
 0x110   : > { %v662_v50 = vadd.f32 %v661_v44, %v556_v31  ;;  %v854_v1 = vpack.c.bf16 %v836_v45, %v832_v39  ;;  %v4024_v31 = vpack.c.bf16 %v652_v55, %v648_v62  ;;  %v4026_v41 = vpack.c.bf16 %v660_v56, %v656_v63  ;;  %v531_v39 = vpop.permute.xlu0 %530  ;;  %v4056_v63 = vld [vmem:[%s4499_s8] sm:$0xff]  }
 0x111   : > { %v665_v47 = vpop.f32.mrf.mxu0  ;;  %v840_v48 = vpop.f32.mrf.mxu1  ;;  %v646_v45 = vadd.f32 %v645_v23, %v541_v40  ;;  %v636_v23 = vadd.f32 %v4002_v13, %v531_v39  ;;  %v849_v13 = vpack.c.bf16 %v4012_v19, %v4004_v14 }
 0x112   : > { %v4020_v59 = vpack.c.bf16 %v662_v50, %v658_v54  ;;  %v666_v60 = vadd.f32 %v665_v47, %v561_v25  ;;  %v638_v47 = vadd.f32 %v4006_v15, %v531_v39  ;;  %v851_v15 = vpack.c.bf16 %v4018_v30, %v4016_v24 }
 0x113   : > { %v667_v51 = vpop.f32.mrf.mxu0  ;;  %v842_v52 = vpop.f32.mrf.mxu1 }
 0x114   : > { %v668_v7 = vadd.f32 %v667_v51, %v561_v25  ;;  %v910_v44 = vadd.bf16 %v4020_v59, %v854_v1  ;;  %v853_v25 = vpack.c.bf16 %v834_v42, %v830_v37  ;;  %v4038_v53 = vpack.c.bf16 %v642_v38, %v638_v47  ;;  %v933_v18 = vpop.permute.xlu0 %932 }
 0x115   : > { %v669_v57 = vpop.f32.mrf.mxu0  ;;  %v844_v58 = vpop.f32.mrf.mxu1  ;;  %v1027_v1 = vlaneseq }
 0x116   : > { %v670_v61 = vadd.f32 %v669_v57, %v566_v34  ;;  %v855_v11 = vpack.c.bf16 %v844_v58, %v840_v48  ;;  %v852_v48 = vpack.c.bf16 %v826_v33, %v822_v28  ;;  %v909_v50 = vadd.bf16 %v4026_v41, %v853_v25 }
 0x117   : > { %v671_v2 = vpop.f32.mrf.mxu0  ;;  %v846_v3 = vpop.f32.mrf.mxu1  ;;  %v850_v28 = vpack.c.bf16 %v4014_v21, %v4008_v17  ;;  %v4046_v33 = vpack.c.bf16 %v640_v29, %v636_v23 }
 0x118   : > { %v4022_v8 = vpack.c.bf16 %v670_v61, %v666_v60  ;;  %v672_v12 = vadd.f32 %v671_v2, %v566_v34  ;;  %v856_v35 = vpack.c.bf16 %v846_v3, %v842_v52  ;;  %v4035_v34 = vpack.c.bf16 %v650_v32, %v646_v45  ;;  %v4068_v3 = vld [vmem:[%s4065_s22] sm:$0x3]  ;;  %v4075_v32 = vpop.permute.xlu0 %963 }
 0x119   : > { %v908_v54 = vadd.bf16 %v4024_v31, %v852_v48  ;;  %v950_v52 = vadd.bf16 %v938_v49, %v910_v44  ;;  %v949_v40 = vadd.bf16 %v938_v49, %v909_v50  ;;  %v906_v42 = vadd.bf16 %v4038_v53, %v850_v28 }
 0x11a   : > { %v911_v27 = vadd.bf16 %v4022_v8, %v855_v11  ;;  %v4030_v22 = vpack.c.bf16 %v672_v12, %v668_v7  ;;  %v907_v37 = vadd.bf16 %v4035_v34, %v851_v15  ;;  %v905_v24 = vadd.bf16 %v4046_v33, %v849_v13 }
 0x11b   : > { %v948_v56 = vadd.bf16 %v933_v18, %v908_v54  ;;  %v1028_v2 = vshrl.u32 %v1027_v1, 7  ;;  %v1025_v12 = vmul.f32 %v1024_v6, %v4068_v3 }
 0x11c   : > { %v912_v20 = vadd.bf16 %v4030_v22, %v856_v35  ;;  %v951_v51 = vadd.bf16 %v943_v43, %v911_v27  ;;  %v947_v30 = vadd.bf16 %v933_v18, %v907_v37  ;;  %v1223_v6 = vpop.permute.xlu0 %1222 }
 0x11d   : > { %v4070_v7 = vsub.s32 1, %v1028_v2  ;;  %v4073_v38 = vsub.s32 0, %v1028_v2 }
 0x11e   : > { %v952_v55 = vadd.bf16 %v943_v43, %v912_v20  ;;  %v928_v43 = vpop.permute.xlu1 %927 }
 0x11f   : > { %v946_v17 = vadd.bf16 %v928_v43, %v906_v42  ;;  %v945_v21 = vadd.bf16 %v928_v43, %v905_v24  ;;  %v1034_v35 = vrot.slane %v1025_v12, %v4070_v7  ;;  %v1030_v25 = vrot.slane %v1025_v12, %v4073_v38 }
 0x120   : > { %3344 = vtanh.bf16 %v952_v55 }
 0x121   : > { %3346 = vtanh.bf16 %v951_v51 }
 0x122   : > { %3348 = vtanh.bf16 %v950_v52  ;;  %v4079_v39 = vpop.permute.xlu1 %968 }
 0x123   : > { %3350 = vtanh.bf16 %v949_v40 }
 0x124   : > { %3352 = vtanh.bf16 %v948_v56 }
 0x125   : > { %3354 = vtanh.bf16 %v947_v30 }
 0x126   : > { %3356 = vtanh.bf16 %v946_v17  ;;  %v1218_v12 = vpop.permute.xlu1 %1217 }
 0x127   : > { %3358 = vtanh.bf16 %v945_v21 }
 0x12e   : > { %v3345_v49 = vpop.eup %3344 }
 0x12f   : > { %v3347_v57 = vpop.eup %3346  ;;  %988 = vmatprep.subr.bf16.mxu0 %v3345_v49 }
 0x130   : > { %v3349_v58 = vpop.eup %3348  ;;  %989 = vmatpush1.bf16.msra.mxu0 %v3347_v57 }
 0x131   : > { %990 = vmatprep.subr.bf16.mxu0 %v3349_v58  ;;  %v3351_v60 = vpop.eup %3350 }
 0x132   : > { %v3353_v14 = vpop.eup %3352 }
 0x133   : > { %v3355_v19 = vpop.eup %3354 }
 0x134   : > { %991 = vmatpush1.bf16.msra.mxu0 %v3351_v60  ;;  %v3357_v61 = vpop.eup %3356 }
 0x135   : > { %992 = vmatprep.subr.bf16.mxu0 %v3353_v14  ;;  %v3359_v62 = vpop.eup %3358 }
 0x138   : > { %993 = vmatpush1.bf16.msra.mxu0 %v3355_v19 }
 0x139   : > { %994 = vmatprep.subr.bf16.mxu0 %v3357_v61 }
 0x13c   : > { %995 = vmatpush1.bf16.msra.mxu0 %v3359_v62 }
 0x13f   : > { %3084 = vmatmul.mubr.msk.bf16.vlgmr.msra.gmra.mxu0 %vm976_vm1, %v4056_v63 }
 0x140   : > { %1273 = vmatprep.mubr.bf16.mxu0 %v3576_v0 }
 0x1ff   : > { %v1014_v11 = vpop.f32.mrf.mxu0 }
 0x200   : > { %v1015_v45 = vadd.f32 %v1014_v11, %v4075_v32 }
 0x201   : > { %v1016_v44 = vpop.f32.mrf.mxu0 }
 0x202   : > { %v1017_v27 = vadd.f32 %v1016_v44, %v4075_v32  ;;  %v1037_v54 = vmul.f32 %v1030_v25, %v1015_v45 }
 0x203   : > { %v1018_v47 = vpop.f32.mrf.mxu0 }
 0x204   : > { %v1019_v48 = vadd.f32 %v1018_v47, %v4079_v39  ;;  %v1038_v29 = vmul.f32 %v1034_v35, %v1017_v27  ;;  %v4095_v28 = vadd.f32 %v1037_v54, %v3738_v9 }
 0x205   : > { %v1020_v20 = vpop.f32.mrf.mxu0 }
 0x206   : > { %v1039_v50 = vmul.f32 %v1030_v25, %v1019_v48  ;;  %v1021_v51 = vadd.f32 %v1020_v20, %v4079_v39  ;;  %v4089_v23 = vadd.f32 %v1038_v29, %v3732_v4  ;;  %v1213_v20 = vpop.permute.xlu0 %1212 }
 0x208   : > { %v1040_v52 = vmul.f32 %v1034_v35, %v1021_v51  ;;  %v4086_v55 = vadd.f32 %v1039_v50, %v3740_v10 }
 0x20a   : > { %v4092_v15 = vadd.f32 %v1040_v52, %v3734_v5  ;;  %v1053_v37 = vpack.c.bf16 %v4086_v55, %v4095_v28 }
 0x20c   : > { %v1054_v18 = vpack.c.bf16 %v4092_v15, %v4089_v23 }
 0x20e   : > { %1069 = vmatprep.subr.bf16.mxu1 %v1054_v18  ;;  %v1208_v18 = vpop.permute.xlu1 %1207 }
 0x20f   : > { %1070 = vmatpush1.bf16.msra.mxu1 %v1053_v37 }
 0x212   : > { %3085 = vmatmul.mubr.msk.bf16.vlgmr.msra.gmra.mxu1 %vm588_vm0, %v3752_v16 }
 0x213   : > { %1097 = vmatprep.mubr.bf16.mxu1 %v3576_v0 }
 0x21a   : > { %3086 = vmatmul.mubr.msk.bf16.gmra.mxu1 %vm588_vm0, %v3780_v26 }
 0x21b   : > { %1107 = vmatprep.mubr.bf16.mxu1 %v3576_v0 }
 0x222   : > { %3087 = vmatmul.mubr.msk.bf16.gmra.mxu1 %vm588_vm0, %v3808_v36 }
 0x223   : > { %1117 = vmatprep.mubr.bf16.mxu1 %v3576_v0 }
 0x22a   : > { %3088 = vmatmul.mubr.msk.bf16.gmra.mxu1 %vm588_vm0, %v3839_v46 }
 0x22b   : > { %1534 = vmatprep.mubr.bf16.mxu1 %v3576_v0 }
 0x2d2   : > { %v1089_v4 = vpop.f32.mrf.mxu1 }
 0x2d4   : > { %v1091_v5 = vpop.f32.mrf.mxu1 }
 0x2d6   : > { %v1093_v9 = vpop.f32.mrf.mxu1 }
 0x2d7   : > { %v1128_v29 = vpack.c.bf16 %v1093_v9, %v1089_v4 }
 0x2d8   : > { %v1095_v10 = vpop.f32.mrf.mxu1 }
 0x2d9   : > { %v1129_v45 = vpack.c.bf16 %v1095_v10, %v1091_v5  ;;  %v1184_v37 = vadd.bf16 %v4046_v33, %v1128_v29 }
 0x2da   : > { %v1099_v40 = vpop.f32.mrf.mxu1 }
 0x2db   : > { %v1185_v54 = vadd.bf16 %v4038_v53, %v1129_v45  ;;  %v1225_v10 = vadd.bf16 %v1208_v18, %v1184_v37 }
 0x2dc   : > { %v1101_v42 = vpop.f32.mrf.mxu1 }
 0x2dd   : > { %v1226_v5 = vadd.bf16 %v1208_v18, %v1185_v54 }
 0x2de   : > { %v1103_v56 = vpop.f32.mrf.mxu1 }
 0x2df   : > { %v1130_v44 = vpack.c.bf16 %v1103_v56, %v1099_v40 }
 0x2e0   : > { %v1105_v13 = vpop.f32.mrf.mxu1 }
 0x2e1   : > { %v1131_v61 = vpack.c.bf16 %v1105_v13, %v1101_v42  ;;  %v1186_v50 = vadd.bf16 %v4035_v34, %v1130_v44 }
 0x2e2   : > { %v1109_v43 = vpop.f32.mrf.mxu1 }
 0x2e3   : > { %v1187_v25 = vadd.bf16 %v4024_v31, %v1131_v61  ;;  %v1227_v40 = vadd.bf16 %v1213_v20, %v1186_v50 }
 0x2e4   : > { %v1111_v24 = vpop.f32.mrf.mxu1 }
 0x2e5   : > { %v1228_v52 = vadd.bf16 %v1213_v20, %v1187_v25 }
 0x2e6   : > { %v1113_v30 = vpop.f32.mrf.mxu1 }
 0x2e7   : > { %v1132_v14 = vpack.c.bf16 %v1113_v30, %v1109_v43 }
 0x2e8   : > { %v1115_v17 = vpop.f32.mrf.mxu1 }
 0x2e9   : > { %v1133_v57 = vpack.c.bf16 %v1115_v17, %v1111_v24  ;;  %v1188_v27 = vadd.bf16 %v4026_v41, %v1132_v14  ;;  %v1285_v17 = vstv %s3106_s20  ;;  %s4446_s20 = scalar_lea.sflag [#allocation5], %s454_s29 }
 0x2ea   : > { %v1119_v21 = vpop.f32.mrf.mxu1 }
 0x2eb   : > { %v1189_v62 = vadd.bf16 %v4020_v59, %v1133_v57  ;;  %v1229_v51 = vadd.bf16 %v1218_v12, %v1188_v27 }
 0x2ec   : > { %v1121_v49 = vpop.f32.mrf.mxu1 }
 0x2ed   : > { %v1230_v47 = vadd.bf16 %v1218_v12, %v1189_v62 }
 0x2ee   : > { %v1123_v58 = vpop.f32.mrf.mxu1 }
 0x2ef   : > { %v1134_v60 = vpack.c.bf16 %v1123_v58, %v1119_v21 }
 0x2f0   : > { %v1125_v19 = vpop.f32.mrf.mxu1 }
 0x2f1   : > { %v1190_v1 = vadd.bf16 %v4022_v8, %v1134_v60  ;;  %v1135_v2 = vpack.c.bf16 %v1125_v19, %v1121_v49  ;;  %v1286_v49 = vmul.f32 %v1285_v17, %v4068_v3  ;;  %v1479_v17 = vpop.permute.xlu1 %1478 }
 0x2f3   : > { %v1191_v11 = vadd.bf16 %v4030_v22, %v1135_v2  ;;  %v1231_v35 = vadd.bf16 %v1223_v6, %v1190_v1  ;;  %v1295_v60 = vrot.slane %v1286_v49, %v4070_v7  ;;  %v1291_v19 = vrot.slane %v1286_v49, %v4073_v38 }
 0x2f5   : > { %v1232_v48 = vadd.bf16 %v1223_v6, %v1191_v11 }
 0x2f7   : > { %3360 = vtanh.bf16 %v1232_v48 }
 0x2f8   : > { %3362 = vtanh.bf16 %v1231_v35 }
 0x2f9   : > { %3364 = vtanh.bf16 %v1230_v47 }
 0x2fa   : > { %3366 = vtanh.bf16 %v1229_v51 }
 0x2fb   : > { %3368 = vtanh.bf16 %v1228_v52 }
 0x2fc   : > { %3370 = vtanh.bf16 %v1227_v40 }
 0x2fd   : > { %3372 = vtanh.bf16 %v1226_v5 }
 0x2fe   : > { %3374 = vtanh.bf16 %v1225_v10 }
 0x305   : > { %v3361_v4 = vpop.eup %3360 }
 0x306   : > { %v3363_v9 = vpop.eup %3362  ;;  %1249 = vmatprep.subr.bf16.mxu0 %v3361_v4 }
 0x307   : > { %v3365_v42 = vpop.eup %3364  ;;  %1250 = vmatpush1.bf16.msra.mxu0 %v3363_v9 }
 0x308   : > { %1251 = vmatprep.subr.bf16.mxu0 %v3365_v42  ;;  %v3367_v56 = vpop.eup %3366 }
 0x309   : > { %v3369_v13 = vpop.eup %3368 }
 0x30a   : > { %v3371_v43 = vpop.eup %3370 }
 0x30b   : > { %1252 = vmatpush1.bf16.msra.mxu0 %v3367_v56  ;;  %v3373_v24 = vpop.eup %3372 }
 0x30c   : > { %1253 = vmatprep.subr.bf16.mxu0 %v3369_v13  ;;  %v3375_v30 = vpop.eup %3374 }
 0x30f   : > { %1254 = vmatpush1.bf16.msra.mxu0 %v3371_v43 }
 0x310   : > { %1255 = vmatprep.subr.bf16.mxu0 %v3373_v24  ;;  %v1484_v24 = vpop.permute.xlu0 %1483 }
 0x313   : > { %1256 = vmatpush1.bf16.msra.mxu0 %v3375_v30 }
 0x316   : > { %3105 = vmatmul.mubr.msk.bf16.vlgmr.msra.gmra.mxu0 %vm976_vm1, %v4056_v63 }
 0x317   : > { %1348 = vmatprep.mubr.bf16.mxu0 %v3576_v0 }
 0x3d6   : > { %v1275_v21 = vpop.f32.mrf.mxu0 }
 0x3d7   : > { %v1276_v14 = vadd.f32 %v1275_v21, %v4075_v32 }
 0x3d8   : > { %v1277_v57 = vpop.f32.mrf.mxu0 }
 0x3d9   : > { %v1278_v58 = vadd.f32 %v1277_v57, %v4075_v32  ;;  %v1298_v12 = vmul.f32 %v1291_v19, %v1276_v14 }
 0x3da   : > { %v1279_v61 = vpop.f32.mrf.mxu0 }
 0x3db   : > { %v1280_v62 = vadd.f32 %v1279_v61, %v4079_v39  ;;  %v1299_v2 = vmul.f32 %v1295_v60, %v1278_v58  ;;  %v4141_v25 = vadd.f32 %v1298_v12, %v4095_v28  ;;  %v1474_v61 = vpop.permute.xlu0 %1473  ;;  %v1469_v12 = vpop.permute.xlu1 %1468 }
 0x3dc   : > { %v1281_v1 = vpop.f32.mrf.mxu0 }
 0x3dd   : > { %v1300_v6 = vmul.f32 %v1291_v19, %v1280_v62  ;;  %v1282_v11 = vadd.f32 %v1281_v1, %v4079_v39  ;;  %v4135_v35 = vadd.f32 %v1299_v2, %v4089_v23 }
 0x3df   : > { %v1301_v44 = vmul.f32 %v1295_v60, %v1282_v11  ;;  %v4132_v27 = vadd.f32 %v1300_v6, %v4086_v55 }
 0x3e1   : > { %v4138_v45 = vadd.f32 %v1301_v44, %v4092_v15  ;;  %v1314_v48 = vpack.c.bf16 %v4132_v27, %v4141_v25 }
 0x3e3   : > { %v1315_v47 = vpack.c.bf16 %v4138_v45, %v4135_v35 }
 0x3e5   : > { %1330 = vmatprep.subr.bf16.mxu0 %v1315_v47 }
 0x3e6   : > { %1331 = vmatpush1.bf16.msra.mxu0 %v1314_v48 }
 0x3e9   : > { %3107 = vmatmul.mubr.msk.bf16.vlgmr.msra.gmra.mxu0 %vm588_vm0, %v3752_v16 }
 0x3ea   : > { %1358 = vmatprep.mubr.bf16.mxu0 %v3576_v0 }
 0x3f1   : > { %3108 = vmatmul.mubr.msk.bf16.gmra.mxu0 %vm588_vm0, %v3780_v26 }
 0x3f2   : > { %1368 = vmatprep.mubr.bf16.mxu0 %v3576_v0 }
 0x3f9   : > { %3109 = vmatmul.mubr.msk.bf16.gmra.mxu0 %vm588_vm0, %v3808_v36 }
 0x3fa   : > { %1378 = vmatprep.mubr.bf16.mxu0 %v3576_v0 }
 0x401   : > { %3110 = vmatmul.mubr.msk.bf16.gmra.mxu0 %vm588_vm0, %v3839_v46 }
 0x402   : > { %1795 = vmatprep.mubr.bf16.mxu0 %v3576_v0 }
 0x4a9   : > { %v1350_v55 = vpop.f32.mrf.mxu0 }
 0x4ab   : > { %v1352_v23 = vpop.f32.mrf.mxu0 }
 0x4ad   : > { %v1354_v16 = vpop.f32.mrf.mxu0 }
 0x4ae   : > { %v1389_v62 = vpack.c.bf16 %v1354_v16, %v1350_v55 }
 0x4af   : > { %v1356_v15 = vpop.f32.mrf.mxu0 }
 0x4b0   : > { %v1390_v58 = vpack.c.bf16 %v1356_v15, %v1352_v23  ;;  %v1445_v44 = vadd.bf16 %v4046_v33, %v1389_v62 }
 0x4b1   : > { %v1360_v28 = vpop.f32.mrf.mxu0 }
 0x4b2   : > { %v1446_v6 = vadd.bf16 %v4038_v53, %v1390_v58  ;;  %v1486_v23 = vadd.bf16 %v1469_v12, %v1445_v44 }
 0x4b3   : > { %v1362_v20 = vpop.f32.mrf.mxu0 }
 0x4b4   : > { %v1487_v48 = vadd.bf16 %v1469_v12, %v1446_v6 }
 0x4b5   : > { %v1364_v29 = vpop.f32.mrf.mxu0 }
 0x4b6   : > { %v1391_v21 = vpack.c.bf16 %v1364_v29, %v1360_v28 }
 0x4b7   : > { %v1366_v26 = vpop.f32.mrf.mxu0 }
 0x4b8   : > { %v1392_v42 = vpack.c.bf16 %v1366_v26, %v1362_v20  ;;  %v1447_v1 = vadd.bf16 %v4035_v34, %v1391_v21 }
 0x4b9   : > { %v1370_v50 = vpop.f32.mrf.mxu0 }
 0x4ba   : > { %v1448_v60 = vadd.bf16 %v4024_v31, %v1392_v42  ;;  %v1488_v47 = vadd.bf16 %v1474_v61, %v1447_v1 }
 0x4bb   : > { %v1372_v51 = vpop.f32.mrf.mxu0 }
 0x4bc   : > { %v1489_v11 = vadd.bf16 %v1474_v61, %v1448_v60 }
 0x4bd   : > { %v1374_v54 = vpop.f32.mrf.mxu0 }
 0x4be   : > { %v1393_v4 = vpack.c.bf16 %v1374_v54, %v1370_v50 }
 0x4bf   : > { %v1376_v52 = vpop.f32.mrf.mxu0 }
 0x4c0   : > { %v1394_v40 = vpack.c.bf16 %v1376_v52, %v1372_v51  ;;  %v1449_v49 = vadd.bf16 %v4026_v41, %v1393_v4  ;;  %v1546_v51 = vstv %s3128_s24  ;;  %s3577_s24 = smov [#allocation7]  }
 0x4c1   : > { %v1380_v18 = vpop.f32.mrf.mxu0  ;;  %v1547_v52 = vmul.f32 %v1546_v51, %v4068_v3  ;;  %v1740_v51 = vpop.permute.xlu1 %1739 }
 0x4c2   : > { %v1450_v56 = vadd.bf16 %v4020_v59, %v1394_v40  ;;  %v1490_v2 = vadd.bf16 %v1479_v17, %v1449_v49 }
 0x4c3   : > { %v1382_v37 = vpop.f32.mrf.mxu0  ;;  %v1556_v40 = vrot.slane %v1547_v52, %v4070_v7 }
 0x4c4   : > { %v1491_v14 = vadd.bf16 %v1479_v17, %v1450_v56 }
 0x4c5   : > { %v1384_v5 = vpop.f32.mrf.mxu0 }
 0x4c6   : > { %v1395_v10 = vpack.c.bf16 %v1384_v5, %v1380_v18 }
 0x4c7   : > { %v1386_v9 = vpop.f32.mrf.mxu0 }
 0x4c8   : > { %v1451_v13 = vadd.bf16 %v4022_v8, %v1395_v10  ;;  %v1396_v43 = vpack.c.bf16 %v1386_v9, %v1382_v37  ;;  %v1552_v10 = vrot.slane %v1547_v52, %v4073_v38 }
 0x4ca   : > { %v1452_v30 = vadd.bf16 %v4030_v22, %v1396_v43  ;;  %v1492_v57 = vadd.bf16 %v1484_v24, %v1451_v13 }
 0x4cc   : > { %v1493_v19 = vadd.bf16 %v1484_v24, %v1452_v30 }
 0x4ce   : > { %3376 = vtanh.bf16 %v1493_v19 }
 0x4cf   : > { %3378 = vtanh.bf16 %v1492_v57 }
 0x4d0   : > { %3380 = vtanh.bf16 %v1491_v14 }
 0x4d1   : > { %3382 = vtanh.bf16 %v1490_v2 }
 0x4d2   : > { %3384 = vtanh.bf16 %v1489_v11 }
 0x4d3   : > { %3386 = vtanh.bf16 %v1488_v47 }
 0x4d4   : > { %3388 = vtanh.bf16 %v1487_v48 }
 0x4d5   : > { %3390 = vtanh.bf16 %v1486_v23 }
 0x4dc   : > { %v3377_v55 = vpop.eup %3376 }
 0x4dd   : > { %v3379_v16 = vpop.eup %3378  ;;  %1510 = vmatprep.subr.bf16.mxu1 %v3377_v55 }
 0x4de   : > { %v3381_v15 = vpop.eup %3380  ;;  %1511 = vmatpush1.bf16.msra.mxu1 %v3379_v16 }
 0x4df   : > { %1512 = vmatprep.subr.bf16.mxu1 %v3381_v15  ;;  %v3383_v28 = vpop.eup %3382 }
 0x4e0   : > { %v3385_v20 = vpop.eup %3384 }
 0x4e1   : > { %v3387_v29 = vpop.eup %3386 }
 0x4e2   : > { %1513 = vmatpush1.bf16.msra.mxu1 %v3383_v28  ;;  %v3389_v26 = vpop.eup %3388 }
 0x4e3   : > { %1514 = vmatprep.subr.bf16.mxu1 %v3385_v20  ;;  %v3391_v50 = vpop.eup %3390 }
 0x4e6   : > { %1515 = vmatpush1.bf16.msra.mxu1 %v3387_v29 }
 0x4e7   : > { %1516 = vmatprep.subr.bf16.mxu1 %v3389_v26  ;;  %v1745_v26 = vpop.permute.xlu0 %1744 }
 0x4ea   : > { %1517 = vmatpush1.bf16.msra.mxu1 %v3391_v50 }
 0x4ed   : > { %3127 = vmatmul.mubr.msk.bf16.vlgmr.msra.gmra.mxu1 %vm976_vm1, %v4056_v63 }
 0x4ee   : > { %1609 = vmatprep.mubr.bf16.mxu1 %v3576_v0 }
 0x5ad   : > { %v1536_v54 = vpop.f32.mrf.mxu1 }
 0x5ae   : > { %v1537_v5 = vadd.f32 %v1536_v54, %v4075_v32 }
 0x5af   : > { %v1538_v18 = vpop.f32.mrf.mxu1 }
 0x5b0   : > { %v1539_v37 = vadd.f32 %v1538_v18, %v4075_v32  ;;  %v1559_v24 = vmul.f32 %v1552_v10, %v1537_v5 }
 0x5b1   : > { %v1540_v4 = vpop.f32.mrf.mxu1 }
 0x5b2   : > { %v1541_v9 = vadd.f32 %v1540_v4, %v4079_v39  ;;  %v1560_v56 = vmul.f32 %v1556_v40, %v1539_v37  ;;  %v4187_v57 = vadd.f32 %v1559_v24, %v4141_v25  ;;  %v1735_v4 = vpop.permute.xlu0 %1734  ;;  %v1730_v24 = vpop.permute.xlu1 %1729 }
 0x5b3   : > { %v1542_v42 = vpop.f32.mrf.mxu1 }
 0x5b4   : > { %v1561_v13 = vmul.f32 %v1552_v10, %v1541_v9  ;;  %v1543_v43 = vadd.f32 %v1542_v42, %v4079_v39  ;;  %v4181_v21 = vadd.f32 %v1560_v56, %v4135_v35  ;;  %v4204_v35 = vld [vmem:[%s4497_s6 + $0x8] sm:$0xff]  }
 0x5b6   : > { %v1562_v30 = vmul.f32 %v1556_v40, %v1543_v43  ;;  %v4178_v17 = vadd.f32 %v1561_v13, %v4132_v27  ;;  %v4196_v27 = vld [vmem:[%s4497_s6] sm:$0xff]  }
 0x5b8   : > { %v4184_v49 = vadd.f32 %v1562_v30, %v4138_v45  ;;  %v1575_v60 = vpack.c.bf16 %v4178_v17, %v4187_v57 }
 0x5ba   : > { %v1576_v58 = vpack.c.bf16 %v4184_v49, %v4181_v21 }
 0x5bc   : > { %1591 = vmatprep.subr.bf16.mxu1 %v1576_v58 }
 0x5bd   : > { %1592 = vmatpush1.bf16.msra.mxu1 %v1575_v60 }
 0x5c0   : > { %3129 = vmatmul.mubr.msk.bf16.vlgmr.msra.gmra.mxu1 %vm588_vm0, %v4196_v27 }
 0x5c1   : > { %1619 = vmatprep.mubr.bf16.mxu1 %v3576_v0 }
 0x5c8   : > { %3130 = vmatmul.mubr.msk.bf16.gmra.mxu1 %vm588_vm0, %v4204_v35 }
 0x5c9   : > { %1629 = vmatprep.mubr.bf16.mxu1 %v3576_v0 }
 0x5d0   : > { %3131 = vmatmul.mubr.msk.bf16.gmra.mxu1 %vm588_vm0, %v3808_v36 }
 0x5d1   : > { %1639 = vmatprep.mubr.bf16.mxu1 %v3576_v0 }
 0x5d8   : > { %3132 = vmatmul.mubr.msk.bf16.gmra.mxu1 %vm588_vm0, %v3839_v46 }
 0x5d9   : > { %2056 = vmatprep.mubr.bf16.mxu1 %v3576_v0 }
 0x680   : > { %v1611_v45 = vpop.f32.mrf.mxu1 }
 0x682   : > { %v1613_v25 = vpop.f32.mrf.mxu1 }
 0x684   : > { %v1615_v14 = vpop.f32.mrf.mxu1 }
 0x685   : > { %v1650_v9 = vpack.c.bf16 %v1615_v14, %v1611_v45 }
 0x686   : > { %v1617_v19 = vpop.f32.mrf.mxu1 }
 0x687   : > { %v1651_v37 = vpack.c.bf16 %v1617_v19, %v1613_v25  ;;  %v1706_v30 = vadd.bf16 %v4046_v33, %v1650_v9 }
 0x688   : > { %v1621_v61 = vpop.f32.mrf.mxu1 }
 0x689   : > { %v1707_v13 = vadd.bf16 %v4038_v53, %v1651_v37  ;;  %v1747_v25 = vadd.bf16 %v1730_v24, %v1706_v30 }
 0x68a   : > { %v1623_v62 = vpop.f32.mrf.mxu1 }
 0x68b   : > { %v1748_v60 = vadd.bf16 %v1730_v24, %v1707_v13 }
 0x68c   : > { %v1625_v1 = vpop.f32.mrf.mxu1 }
 0x68d   : > { %v1652_v54 = vpack.c.bf16 %v1625_v1, %v1621_v61 }
 0x68e   : > { %v1627_v2 = vpop.f32.mrf.mxu1 }
 0x68f   : > { %v1653_v15 = vpack.c.bf16 %v1627_v2, %v1623_v62  ;;  %v1708_v42 = vadd.bf16 %v4035_v34, %v1652_v54 }
 0x690   : > { %v1631_v6 = vpop.f32.mrf.mxu1 }
 0x691   : > { %v1709_v40 = vadd.bf16 %v4024_v31, %v1653_v15  ;;  %v1749_v58 = vadd.bf16 %v1735_v4, %v1708_v42 }
 0x692   : > { %v1633_v11 = vpop.f32.mrf.mxu1 }
 0x693   : > { %v1750_v43 = vadd.bf16 %v1735_v4, %v1709_v40 }
 0x694   : > { %v1635_v12 = vpop.f32.mrf.mxu1 }
 0x695   : > { %v1654_v46 = vpack.c.bf16 %v1635_v12, %v1631_v6 }
 0x696   : > { %v1637_v44 = vpop.f32.mrf.mxu1 }
 0x697   : > { %v1655_v48 = vpack.c.bf16 %v1637_v44, %v1633_v11  ;;  %v1710_v52 = vadd.bf16 %v4026_v41, %v1654_v46  ;;  %v1807_v11 = vstv %s3150_s30  ;;  %s456_s30 = scalar_lea.vmem [#allocation7], %s3043_s21 }
 0x698   : > { %v1641_v36 = vpop.f32.mrf.mxu1  ;;  %v1808_v44 = vmul.f32 %v1807_v11, %v4068_v3  ;;  %v2006_v11 = vpop.permute.xlu0 %2005  ;;  %s2900_s11 = sshll.u32 %s456_s30, 4  ;;  %s4438_s11 = int_to_ptr.vmem [resolvable:$true] %s2900_s11 }
 0x699   : > { %v1711_v28 = vadd.bf16 %v4020_v59, %v1655_v48  ;;  %v1751_v56 = vadd.bf16 %v1740_v51, %v1710_v52  ;;  %s3493_s16 = scalar_lea.vmem %s4438_s11, 512 }
 0x69a   : > { %v1643_v47 = vpop.f32.mrf.mxu1  ;;  %v1817_v48 = vrot.slane %v1808_v44, %v4070_v7  ;;  %p3494_p10 = scmp.ne.s32.totalorder %s4438_s11, %s3493_s16 }
 0x69b   : > { %v1752_v5 = vadd.bf16 %v1740_v51, %v1711_v28 }
 0x69c   : > { %v1645_v23 = vpop.f32.mrf.mxu1  ;;  %p3495_p11 = pnand %p3494_p10, %p3675_p4 }
 0x69d   : > { %v1656_v55 = vpack.c.bf16 %v1645_v23, %v1641_v36 }
 0x69e   : > { %v1647_v16 = vpop.f32.mrf.mxu1  ;;  %p3496_p13 = pneg %p3495_p11 }
 0x69f   : > { %v1712_v20 = vadd.bf16 %v4022_v8, %v1656_v55  ;;  %v1657_v29 = vpack.c.bf16 %v1647_v16, %v1643_v47  ;;  %v1813_v55 = vrot.slane %v1808_v44, %v4073_v38  ;;  %v2001_v44 = vpop.permute.xlu1 %2000 }
 0x6a1   : > { %v1713_v50 = vadd.bf16 %v4030_v22, %v1657_v29  ;;  %v1753_v18 = vadd.bf16 %v1745_v26, %v1712_v20 }
 0x6a3   : > { %v1754_v10 = vadd.bf16 %v1745_v26, %v1713_v50 }
 0x6a5   : > { %3392 = vtanh.bf16 %v1754_v10 }
 0x6a6   : > { %3394 = vtanh.bf16 %v1753_v18 }
 0x6a7   : > { %3396 = vtanh.bf16 %v1752_v5 }
 0x6a8   : > { %3398 = vtanh.bf16 %v1751_v56 }
 0x6a9   : > { %3400 = vtanh.bf16 %v1750_v43 }
 0x6aa   : > { %3402 = vtanh.bf16 %v1749_v58 }
 0x6ab   : > { %3404 = vtanh.bf16 %v1748_v60 }
 0x6ac   : > { %3406 = vtanh.bf16 %v1747_v25 }
 0x6b3   : > { %v3393_v45 = vpop.eup %3392 }
 0x6b4   : > { %v3395_v14 = vpop.eup %3394  ;;  %1771 = vmatprep.subr.bf16.mxu0 %v3393_v45 }
 0x6b5   : > { %v3397_v19 = vpop.eup %3396  ;;  %1772 = vmatpush1.bf16.msra.mxu0 %v3395_v14 }
 0x6b6   : > { %1773 = vmatprep.subr.bf16.mxu0 %v3397_v19  ;;  %v3399_v61 = vpop.eup %3398 }
 0x6b7   : > { %v3401_v62 = vpop.eup %3400 }
 0x6b8   : > { %v3403_v1 = vpop.eup %3402 }
 0x6b9   : > { %1774 = vmatpush1.bf16.msra.mxu0 %v3399_v61  ;;  %v3405_v2 = vpop.eup %3404 }
 0x6ba   : > { %1775 = vmatprep.subr.bf16.mxu0 %v3401_v62  ;;  %v3407_v6 = vpop.eup %3406 }
 0x6bd   : > { %1776 = vmatpush1.bf16.msra.mxu0 %v3403_v1 }
 0x6be   : > { %1777 = vmatprep.subr.bf16.mxu0 %v3405_v2 }
 0x6c1   : > { %1778 = vmatpush1.bf16.msra.mxu0 %v3407_v6 }
 0x6c4   : > { %3149 = vmatmul.mubr.msk.bf16.vlgmr.msra.gmra.mxu0 %vm976_vm1, %v4056_v63 }
 0x6c5   : > { %1870 = vmatprep.mubr.bf16.mxu0 %v3576_v0 }
 0x784   : > { %v1797_v12 = vpop.f32.mrf.mxu0 }
 0x785   : > { %v1798_v23 = vadd.f32 %v1797_v12, %v4075_v32 }
 0x786   : > { %v1799_v36 = vpop.f32.mrf.mxu0 }
 0x787   : > { %v1800_v47 = vadd.f32 %v1799_v36, %v4075_v32  ;;  %v1820_v26 = vmul.f32 %v1813_v55, %v1798_v23 }
 0x788   : > { %v1801_v46 = vpop.f32.mrf.mxu0 }
 0x789   : > { %v1802_v16 = vadd.f32 %v1801_v46, %v4079_v39  ;;  %v1821_v28 = vmul.f32 %v1817_v48, %v1800_v47  ;;  %v4243_v18 = vadd.f32 %v1820_v26, %v4187_v57 }
 0x78a   : > { %v1803_v15 = vpop.f32.mrf.mxu0 }
 0x78b   : > { %v1822_v20 = vmul.f32 %v1813_v55, %v1802_v16  ;;  %v1804_v29 = vadd.f32 %v1803_v15, %v4079_v39  ;;  %v4237_v54 = vadd.f32 %v1821_v28, %v4181_v21  ;;  %v4266_v21 = vld [vmem:[%s4497_s6 + $0x18] sm:$0xff]   ;;  %v1996_v15 = vpop.permute.xlu0 %1995 }
 0x78d   : > { %v1823_v50 = vmul.f32 %v1817_v48, %v1804_v29  ;;  %v4234_v51 = vadd.f32 %v1822_v20, %v4178_v17  ;;  %v4258_v17 = vld [vmem:[%s4497_s6 + $0x10] sm:$0xff]  }
 0x78f   : > { %v4240_v52 = vadd.f32 %v1823_v50, %v4184_v49  ;;  %v1836_v40 = vpack.c.bf16 %v4234_v51, %v4243_v18 }
 0x791   : > { %v1837_v37 = vpack.c.bf16 %v4240_v52, %v4237_v54 }
 0x793   : > { %1852 = vmatprep.subr.bf16.mxu0 %v1837_v37  ;;  %v1991_v37 = vpop.permute.xlu1 %1990 }
 0x794   : > { %1853 = vmatpush1.bf16.msra.mxu0 %v1836_v40 }
 0x797   : > { %3151 = vmatmul.mubr.msk.bf16.vlgmr.msra.gmra.mxu0 %vm588_vm0, %v4196_v27 }
 0x798   : > { %1880 = vmatprep.mubr.bf16.mxu0 %v3576_v0 }
 0x79f   : > { %3152 = vmatmul.mubr.msk.bf16.gmra.mxu0 %vm588_vm0, %v4204_v35 }
 0x7a0   : > { %1890 = vmatprep.mubr.bf16.mxu0 %v3576_v0 }
 0x7a7   : > { %3153 = vmatmul.mubr.msk.bf16.gmra.mxu0 %vm588_vm0, %v4258_v17 }
 0x7a8   : > { %1900 = vmatprep.mubr.bf16.mxu0 %v3576_v0 }
 0x7af   : > { %3154 = vmatmul.mubr.msk.bf16.gmra.mxu0 %vm588_vm0, %v4266_v21 }
 0x7b0   : > { %2317 = vmatprep.mubr.bf16.mxu0 %v3576_v0 }
 0x857   : > { %v1872_v49 = vpop.f32.mrf.mxu0 }
 0x859   : > { %v1874_v57 = vpop.f32.mrf.mxu0 }
 0x85b   : > { %v1876_v5 = vpop.f32.mrf.mxu0 }
 0x85c   : > { %v1911_v28 = vpack.c.bf16 %v1876_v5, %v1872_v49 }
 0x85d   : > { %v1878_v10 = vpop.f32.mrf.mxu0 }
 0x85e   : > { %v1912_v23 = vpack.c.bf16 %v1878_v10, %v1874_v57  ;;  %v1967_v40 = vadd.bf16 %v4046_v33, %v1911_v28 }
 0x85f   : > { %v1882_v4 = vpop.f32.mrf.mxu0 }
 0x860   : > { %v1968_v26 = vadd.bf16 %v4038_v53, %v1912_v23  ;;  %v2008_v10 = vadd.bf16 %v1991_v37, %v1967_v40 }
 0x861   : > { %v1884_v9 = vpop.f32.mrf.mxu0 }
 0x862   : > { %v2009_v57 = vadd.bf16 %v1991_v37, %v1968_v26 }
 0x863   : > { %v1886_v42 = vpop.f32.mrf.mxu0 }
 0x864   : > { %v1913_v36 = vpack.c.bf16 %v1886_v42, %v1882_v4 }
 0x865   : > { %v1888_v56 = vpop.f32.mrf.mxu0 }
 0x866   : > { %v1914_v62 = vpack.c.bf16 %v1888_v56, %v1884_v9  ;;  %v1969_v20 = vadd.bf16 %v4035_v34, %v1913_v36 }
 0x867   : > { %v1892_v13 = vpop.f32.mrf.mxu0 }
 0x868   : > { %v1970_v55 = vadd.bf16 %v4024_v31, %v1914_v62  ;;  %v2010_v4 = vadd.bf16 %v1996_v15, %v1969_v20 }
 0x869   : > { %v1894_v43 = vpop.f32.mrf.mxu0 }
 0x86a   : > { %v2011_v50 = vadd.bf16 %v1996_v15, %v1970_v55 }
 0x86b   : > { %v1896_v24 = vpop.f32.mrf.mxu0 }
 0x86c   : > { %v1915_v19 = vpack.c.bf16 %v1896_v24, %v1892_v13 }
 0x86d   : > { %v1898_v30 = vpop.f32.mrf.mxu0 }
 0x86e   : > { %v1916_v25 = vpack.c.bf16 %v1898_v30, %v1894_v43  ;;  %v1971_v47 = vadd.bf16 %v4026_v41, %v1915_v19  ;;  %v2068_v30 = vstv %s3172_s0  ;;  %s4443_s0 = scalar_lea.hbm %s4501_s10, %s3255_s1 }
 0x86f   : > { %v1902_v58 = vpop.f32.mrf.mxu0 }
 0x870   : > { %v1972_v1 = vadd.bf16 %v4020_v59, %v1916_v25  ;;  %v2012_v29 = vadd.bf16 %v2001_v44, %v1971_v47 }
 0x871   : > { %v1904_v60 = vpop.f32.mrf.mxu0 }
 0x872   : > { %v2013_v46 = vadd.bf16 %v2001_v44, %v1972_v1 }
 0x873   : > { %v1906_v45 = vpop.f32.mrf.mxu0 }
 0x874   : > { %v1917_v14 = vpack.c.bf16 %v1906_v45, %v1902_v58 }
 0x875   : > { %v1908_v61 = vpop.f32.mrf.mxu0 }
 0x876   : > { %v1973_v2 = vadd.bf16 %v4022_v8, %v1917_v14  ;;  %v1918_v6 = vpack.c.bf16 %v1908_v61, %v1904_v60  ;;  %v2069_v60 = vmul.f32 %v2068_v30, %v4068_v3  ;;  %v2262_v30 = vpop.permute.xlu1 %2261 }
 0x878   : > { %v1974_v12 = vadd.bf16 %v4030_v22, %v1918_v6  ;;  %v2014_v48 = vadd.bf16 %v2006_v11, %v1973_v2  ;;  %v2078_v14 = vrot.slane %v2069_v60, %v4070_v7  ;;  %v2074_v61 = vrot.slane %v2069_v60, %v4073_v38 }
 0x87a   : > { %v2015_v16 = vadd.bf16 %v2006_v11, %v1974_v12 }
 0x87c   : > { %3408 = vtanh.bf16 %v2015_v16 }
 0x87d   : > { %3410 = vtanh.bf16 %v2014_v48 }
 0x87e   : > { %3412 = vtanh.bf16 %v2013_v46 }
 0x87f   : > { %3414 = vtanh.bf16 %v2012_v29 }
 0x880   : > { %3416 = vtanh.bf16 %v2011_v50 }
 0x881   : > { %3418 = vtanh.bf16 %v2010_v4 }
 0x882   : > { %3420 = vtanh.bf16 %v2009_v57 }
 0x883   : > { %3422 = vtanh.bf16 %v2008_v10 }
 0x88a   : > { %v3409_v49 = vpop.eup %3408 }
 0x88b   : > { %v3411_v5 = vpop.eup %3410  ;;  %2032 = vmatprep.subr.bf16.mxu1 %v3409_v49 }
 0x88c   : > { %v3413_v9 = vpop.eup %3412  ;;  %2033 = vmatpush1.bf16.msra.mxu1 %v3411_v5 }
 0x88d   : > { %2034 = vmatprep.subr.bf16.mxu1 %v3413_v9  ;;  %v3415_v42 = vpop.eup %3414 }
 0x88e   : > { %v3417_v56 = vpop.eup %3416 }
 0x88f   : > { %v3419_v13 = vpop.eup %3418 }
 0x890   : > { %2035 = vmatpush1.bf16.msra.mxu1 %v3415_v42  ;;  %v3421_v43 = vpop.eup %3420 }
 0x891   : > { %2036 = vmatprep.subr.bf16.mxu1 %v3417_v56  ;;  %v3423_v24 = vpop.eup %3422 }
 0x894   : > { %2037 = vmatpush1.bf16.msra.mxu1 %v3419_v13 }
 0x895   : > { %2038 = vmatprep.subr.bf16.mxu1 %v3421_v43  ;;  %v2267_v43 = vpop.permute.xlu0 %2266 }
 0x898   : > { %2039 = vmatpush1.bf16.msra.mxu1 %v3423_v24 }
 0x89b   : > { %3171 = vmatmul.mubr.msk.bf16.vlgmr.msra.gmra.mxu1 %vm976_vm1, %v4056_v63 }
 0x89c   : > { %2131 = vmatprep.mubr.bf16.mxu1 %v3576_v0 }
 0x95b   : > { %v2058_v58 = vpop.f32.mrf.mxu1 }
 0x95c   : > { %v2059_v19 = vadd.f32 %v2058_v58, %v4075_v32 }
 0x95d   : > { %v2060_v25 = vpop.f32.mrf.mxu1 }
 0x95e   : > { %v2061_v45 = vadd.f32 %v2060_v25, %v4075_v32  ;;  %v2081_v12 = vmul.f32 %v2074_v61, %v2059_v19 }
 0x95f   : > { %v2062_v62 = vpop.f32.mrf.mxu1 }
 0x960   : > { %v2063_v1 = vadd.f32 %v2062_v62, %v4079_v39  ;;  %v2082_v2 = vmul.f32 %v2078_v14, %v2061_v45  ;;  %v4299_v48 = vadd.f32 %v2081_v12, %v4243_v18  ;;  %v2257_v62 = vpop.permute.xlu0 %2256  ;;  %v2252_v12 = vpop.permute.xlu1 %2251 }
 0x961   : > { %v2064_v63 = vpop.f32.mrf.mxu1 }
 0x962   : > { %v2083_v6 = vmul.f32 %v2074_v61, %v2063_v1  ;;  %v2065_v11 = vadd.f32 %v2064_v63, %v4079_v39  ;;  %v4293_v36 = vadd.f32 %v2082_v2, %v4237_v54 }
 0x964   : > { %v2084_v44 = vmul.f32 %v2078_v14, %v2065_v11  ;;  %v4290_v3 = vadd.f32 %v2083_v6, %v4234_v51 }
 0x966   : > { %v4296_v47 = vadd.f32 %v2084_v44, %v4240_v52  ;;  %v2097_v55 = vpack.c.bf16 %v4290_v3, %v4299_v48 }
 0x968   : > { %v2098_v23 = vpack.c.bf16 %v4296_v47, %v4293_v36 }
 0x96a   : > { %2113 = vmatprep.subr.bf16.mxu1 %v2098_v23 }
 0x96b   : > { %2114 = vmatpush1.bf16.msra.mxu1 %v2097_v55 }
 0x96e   : > { %3173 = vmatmul.mubr.msk.bf16.vlgmr.msra.gmra.mxu1 %vm588_vm0, %v4196_v27 }
 0x96f   : > { %2141 = vmatprep.mubr.bf16.mxu1 %v3576_v0 }
 0x976   : > { %3174 = vmatmul.mubr.msk.bf16.gmra.mxu1 %vm588_vm0, %v4204_v35 }
 0x977   : > { %2151 = vmatprep.mubr.bf16.mxu1 %v3576_v0 }
 0x97e   : > { %3175 = vmatmul.mubr.msk.bf16.gmra.mxu1 %vm588_vm0, %v4258_v17 }
 0x97f   : > { %2161 = vmatprep.mubr.bf16.mxu1 %v3576_v0 }
 0x986   : > { %3176 = vmatmul.mubr.msk.bf16.gmra.mxu1 %vm588_vm0, %v4266_v21 }
 0x987   : > { %2578 = vmatprep.mubr.bf16.mxu1 %v3576_v0 }
 0xa2e   : > { %v2133_v51 = vpop.f32.mrf.mxu1 }
 0xa30   : > { %v2135_v54 = vpop.f32.mrf.mxu1 }
 0xa32   : > { %v2137_v52 = vpop.f32.mrf.mxu1 }
 0xa33   : > { %v2172_v1 = vpack.c.bf16 %v2137_v52, %v2133_v51 }
 0xa34   : > { %v2139_v18 = vpop.f32.mrf.mxu1 }
 0xa35   : > { %v2173_v45 = vpack.c.bf16 %v2139_v18, %v2135_v54  ;;  %v2228_v44 = vadd.bf16 %v4046_v33, %v2172_v1 }
 0xa36   : > { %v2143_v46 = vpop.f32.mrf.mxu1 }
 0xa37   : > { %v2229_v6 = vadd.bf16 %v4038_v53, %v2173_v45  ;;  %v2269_v54 = vadd.bf16 %v2252_v12, %v2228_v44 }
 0xa38   : > { %v2145_v16 = vpop.f32.mrf.mxu1 }
 0xa39   : > { %v2270_v55 = vadd.bf16 %v2252_v12, %v2229_v6 }
 0xa3a   : > { %v2147_v15 = vpop.f32.mrf.mxu1 }
 0xa3b   : > { %v2174_v58 = vpack.c.bf16 %v2147_v15, %v2143_v46 }
 0xa3c   : > { %v2149_v28 = vpop.f32.mrf.mxu1 }
 0xa3d   : > { %v2175_v9 = vpack.c.bf16 %v2149_v28, %v2145_v16  ;;  %v2230_v63 = vadd.bf16 %v4035_v34, %v2174_v58 }
 0xa3e   : > { %v2153_v20 = vpop.f32.mrf.mxu1 }
 0xa3f   : > { %v2231_v14 = vadd.bf16 %v4024_v31, %v2175_v9  ;;  %v2271_v23 = vadd.bf16 %v2257_v62, %v2230_v63 }
 0xa40   : > { %v2155_v29 = vpop.f32.mrf.mxu1 }
 0xa41   : > { %v2272_v11 = vadd.bf16 %v2257_v62, %v2231_v14 }
 0xa42   : > { %v2157_v26 = vpop.f32.mrf.mxu1 }
 0xa43   : > { %v2176_v49 = vpack.c.bf16 %v2157_v26, %v2153_v20  ;;  %v2329_v26 = vstv %s3194_s27  ;;  %s3497_s27 = sshll.u32 %s3577_s24, 4  ;;  %s3498_s27 = int_to_ptr.vmem [resolvable:$false] %s3497_s27 }
 0xa44   : > { %v2159_v50 = vpop.f32.mrf.mxu1  ;;  %p3500_p0 = scmp.lt.s32.totalorder %s4438_s11, %s3498_s27 }
 0xa45   : > { %v2177_v4 = vpack.c.bf16 %v2159_v50, %v2155_v29  ;;  %v2232_v60 = vadd.bf16 %v4026_v41, %v2176_v49  ;;  %v4328_v29 = vld [vmem:[%s4499_s8] sm:$0xff]  }
 0xa46   : > { %v2163_v37 = vpop.f32.mrf.mxu1 }
 0xa47   : > { %v2233_v42 = vadd.bf16 %v4020_v59, %v2177_v4  ;;  %v2273_v2 = vadd.bf16 %v2262_v30, %v2232_v60 }
 0xa48   : > { %v2165_v40 = vpop.f32.mrf.mxu1 }
 0xa49   : > { %v2274_v19 = vadd.bf16 %v2262_v30, %v2233_v42 }
 0xa4a   : > { %v2167_v57 = vpop.f32.mrf.mxu1 }
 0xa4b   : > { %v2178_v10 = vpack.c.bf16 %v2167_v57, %v2163_v37  ;;  %v4334_v37 = vld [vmem:[%s4065_s22] sm:$0x3]  ;;  %s3216_s22 = sld [smem:[#allocation4 + $0x6]] }
 0xa4c   : > { %v2169_v5 = vpop.f32.mrf.mxu1 }
 0xa4d   : > { %v2234_v56 = vadd.bf16 %v4022_v8, %v2178_v10  ;;  %v2179_v13 = vpack.c.bf16 %v2169_v5, %v2165_v40  ;;  %v2330_v40 = vmul.f32 %v4334_v37, %v2329_v26  ;;  %v2528_v26 = vpop.permute.xlu0 %2527 }
 0xa4f   : > { %v2235_v24 = vadd.bf16 %v4030_v22, %v2179_v13  ;;  %v2275_v25 = vadd.bf16 %v2267_v43, %v2234_v56  ;;  %v2339_v10 = vrot.slane %v2330_v40, %v4070_v7  ;;  %v2335_v5 = vrot.slane %v2330_v40, %v4073_v38  ;;  %v2523_v40 = vpop.permute.xlu1 %2522 }
 0xa51   : > { %v2276_v61 = vadd.bf16 %v2267_v43, %v2235_v24 }
 0xa53   : > { %3424 = vtanh.bf16 %v2276_v61 }
 0xa54   : > { %3426 = vtanh.bf16 %v2275_v25 }
 0xa55   : > { %3428 = vtanh.bf16 %v2274_v19 }
 0xa56   : > { %3430 = vtanh.bf16 %v2273_v2 }
 0xa57   : > { %3432 = vtanh.bf16 %v2272_v11 }
 0xa58   : > { %3434 = vtanh.bf16 %v2271_v23 }
 0xa59   : > { %3436 = vtanh.bf16 %v2270_v55 }
 0xa5a   : > { %3438 = vtanh.bf16 %v2269_v54 }
 0xa61   : > { %v3425_v51 = vpop.eup %3424 }
 0xa62   : > { %v3427_v52 = vpop.eup %3426  ;;  %2293 = vmatprep.subr.bf16.mxu0 %v3425_v51 }
 0xa63   : > { %v3429_v18 = vpop.eup %3428  ;;  %2294 = vmatpush1.bf16.msra.mxu0 %v3427_v52 }
 0xa64   : > { %2295 = vmatprep.subr.bf16.mxu0 %v3429_v18  ;;  %v3431_v46 = vpop.eup %3430 }
 0xa65   : > { %v3433_v16 = vpop.eup %3432 }
 0xa66   : > { %v3435_v15 = vpop.eup %3434 }
 0xa67   : > { %2296 = vmatpush1.bf16.msra.mxu0 %v3431_v46  ;;  %v3437_v28 = vpop.eup %3436 }
 0xa68   : > { %2297 = vmatprep.subr.bf16.mxu0 %v3433_v16  ;;  %v3439_v20 = vpop.eup %3438 }
 0xa6b   : > { %2298 = vmatpush1.bf16.msra.mxu0 %v3435_v15 }
 0xa6c   : > { %2299 = vmatprep.subr.bf16.mxu0 %v3437_v28 }
 0xa6f   : > { %2300 = vmatpush1.bf16.msra.mxu0 %v3439_v20 }
 0xa72   : > { %3193 = vmatmul.mubr.msk.bf16.vlgmr.msra.gmra.mxu0 %vm976_vm1, %v4328_v29 }
 0xa73   : > { %2392 = vmatprep.mubr.bf16.mxu0 %v3576_v0 }
 0xb32   : > { %v2319_v50 = vpop.f32.mrf.mxu0 }
 0xb33   : > { %v2320_v49 = vadd.f32 %v2319_v50, %v4075_v32 }
 0xb34   : > { %v2321_v4 = vpop.f32.mrf.mxu0 }
 0xb35   : > { %v2322_v57 = vadd.f32 %v2321_v4, %v4075_v32  ;;  %v2342_v30 = vmul.f32 %v2335_v5, %v2320_v49 }
 0xb36   : > { %v2323_v9 = vpop.f32.mrf.mxu0 }
 0xb37   : > { %v2324_v42 = vadd.f32 %v2323_v9, %v4079_v39  ;;  %v2343_v13 = vmul.f32 %v2339_v10, %v2322_v57  ;;  %v4353_v14 = vadd.f32 %v2342_v30, %v4299_v48 }
 0xb38   : > { %v2325_v56 = vpop.f32.mrf.mxu0 }
 0xb39   : > { %v2344_v43 = vmul.f32 %v2335_v5, %v2324_v42  ;;  %v2326_v24 = vadd.f32 %v2325_v56, %v4079_v39  ;;  %v4347_v25 = vadd.f32 %v2343_v13, %v4293_v36  ;;  %v2518_v56 = vpop.permute.xlu0 %2517 }
 0xb3b   : > { %v2345_v58 = vmul.f32 %v2339_v10, %v2326_v24  ;;  %v4344_v60 = vadd.f32 %v2344_v43, %v4290_v3 }
 0xb3d   : > { %v4350_v45 = vadd.f32 %v2345_v58, %v4296_v47  ;;  %v2358_v61 = vpack.c.bf16 %v4344_v60, %v4353_v14 }
 0xb3f   : > { %v2359_v19 = vpack.c.bf16 %v4350_v45, %v4347_v25 }
 0xb41   : > { %2374 = vmatprep.subr.bf16.mxu0 %v2359_v19  ;;  %v2513_v19 = vpop.permute.xlu1 %2512 }
 0xb42   : > { %2375 = vmatpush1.bf16.msra.mxu0 %v2358_v61 }
 0xb45   : > { %3195 = vmatmul.mubr.msk.bf16.vlgmr.msra.gmra.mxu0 %vm588_vm0, %v4196_v27 }
 0xb46   : > { %2402 = vmatprep.mubr.bf16.mxu0 %v3576_v0 }
 0xb4d   : > { %3196 = vmatmul.mubr.msk.bf16.gmra.mxu0 %vm588_vm0, %v4204_v35 }
 0xb4e   : > { %2412 = vmatprep.mubr.bf16.mxu0 %v3576_v0 }
 0xb55   : > { %3197 = vmatmul.mubr.msk.bf16.gmra.mxu0 %vm588_vm0, %v4258_v17 }
 0xb56   : > { %2422 = vmatprep.mubr.bf16.mxu0 %v3576_v0 }
 0xb5d   : > { %3198 = vmatmul.mubr.msk.bf16.gmra.mxu0 %vm588_vm0, %v4266_v21 }
 0xb5e   : > { %2839 = vmatprep.mubr.bf16.mxu0 %v3576_v0 }
 0xc05   : > { %v2394_v3 = vpop.f32.mrf.mxu0 }
 0xc07   : > { %v2396_v36 = vpop.f32.mrf.mxu0 }
 0xc09   : > { %v2398_v47 = vpop.f32.mrf.mxu0 }
 0xc0a   : > { %v2433_v13 = vpack.c.bf16 %v2398_v47, %v2394_v3 }
 0xc0b   : > { %v2400_v48 = vpop.f32.mrf.mxu0 }
 0xc0c   : > { %v2434_v49 = vpack.c.bf16 %v2400_v48, %v2396_v36  ;;  %v2489_v61 = vadd.bf16 %v4046_v33, %v2433_v13 }
 0xc0d   : > { %v2404_v62 = vpop.f32.mrf.mxu0 }
 0xc0e   : > { %v2490_v30 = vadd.bf16 %v4038_v53, %v2434_v49  ;;  %v2530_v48 = vadd.bf16 %v2513_v19, %v2489_v61 }
 0xc0f   : > { %v2406_v1 = vpop.f32.mrf.mxu0 }
 0xc10   : > { %v2531_v36 = vadd.bf16 %v2513_v19, %v2490_v30 }
 0xc11   : > { %v2408_v63 = vpop.f32.mrf.mxu0 }
 0xc12   : > { %v2435_v4 = vpack.c.bf16 %v2408_v63, %v2404_v62 }
 0xc13   : > { %v2410_v2 = vpop.f32.mrf.mxu0 }
 0xc14   : > { %v2436_v16 = vpack.c.bf16 %v2410_v2, %v2406_v1  ;;  %v2491_v43 = vadd.bf16 %v4035_v34, %v2435_v4 }
 0xc15   : > { %v2414_v6 = vpop.f32.mrf.mxu0 }
 0xc16   : > { %v2492_v5 = vadd.bf16 %v4024_v31, %v2436_v16  ;;  %v2532_v62 = vadd.bf16 %v2518_v56, %v2491_v43 }
 0xc17   : > { %v2416_v11 = vpop.f32.mrf.mxu0 }
 0xc18   : > { %v2533_v58 = vadd.bf16 %v2518_v56, %v2492_v5 }
 0xc19   : > { %v2418_v12 = vpop.f32.mrf.mxu0 }
 0xc1a   : > { %v2437_v18 = vpack.c.bf16 %v2418_v12, %v2414_v6 }
 0xc1b   : > { %v2420_v44 = vpop.f32.mrf.mxu0 }
 0xc1c   : > { %v2438_v54 = vpack.c.bf16 %v2420_v44, %v2416_v11  ;;  %v2493_v57 = vadd.bf16 %v4026_v41, %v2437_v18  ;;  %v2590_v44 = vstv %s3216_s22  ;;  %s3499_s22 = scalar_lea.vmem %s3498_s27, 1024 }
 0xc1d   : > { %v2424_v23 = vpop.f32.mrf.mxu0  ;;  %p3501_p1 = scmp.lt.s32.totalorder %s3499_s22, %s3493_s16 }
 0xc1e   : > { %v2494_v15 = vadd.bf16 %v4020_v59, %v2438_v54  ;;  %v2534_v24 = vadd.bf16 %v2523_v40, %v2493_v57 }
 0xc1f   : > { %v2426_v55 = vpop.f32.mrf.mxu0  ;;  %p3502_p2 = por %p3501_p1, %p3500_p0 }
 0xc20   : > { %v2535_v9 = vadd.bf16 %v2523_v40, %v2494_v15 }
 0xc21   : > { %v2428_v51 = vpop.f32.mrf.mxu0  ;;  %p3503_p3 = pnand %p3502_p2, %p3496_p13 }
 0xc22   : > { %v2439_v52 = vpack.c.bf16 %v2428_v51, %v2424_v23 }
 0xc23   : > { %v2430_v46 = vpop.f32.mrf.mxu0 }
 0xc24   : > { %v2495_v28 = vadd.bf16 %v4022_v8, %v2439_v52  ;;  %v2440_v20 = vpack.c.bf16 %v2430_v46, %v2426_v55  ;;  %v2591_v55 = vmul.f32 %v4334_v37, %v2590_v44 }
 0xc26   : > { %v2496_v50 = vadd.bf16 %v4030_v22, %v2440_v20  ;;  %v2536_v10 = vadd.bf16 %v2528_v26, %v2495_v28  ;;  %v2600_v52 = vrot.slane %v2591_v55, %v4070_v7  ;;  %v2596_v46 = vrot.slane %v2591_v55, %v4073_v38 }
 0xc28   : > { %v2537_v42 = vadd.bf16 %v2528_v26, %v2496_v50 }
 0xc2a   : > { %3440 = vtanh.bf16 %v2537_v42 }
 0xc2b   : > { %3442 = vtanh.bf16 %v2536_v10 }
 0xc2c   : > { %3444 = vtanh.bf16 %v2535_v9 }
 0xc2d   : > { %3446 = vtanh.bf16 %v2534_v24 }
 0xc2e   : > { %3448 = vtanh.bf16 %v2533_v58 }
 0xc2f   : > { %3450 = vtanh.bf16 %v2532_v62 }
 0xc30   : > { %3452 = vtanh.bf16 %v2531_v36 }
 0xc31   : > { %3454 = vtanh.bf16 %v2530_v48 }
 0xc38   : > { %v3441_v3 = vpop.eup %3440 }
 0xc39   : > { %v3443_v47 = vpop.eup %3442  ;;  %2554 = vmatprep.subr.bf16.mxu1 %v3441_v3 }
 0xc3a   : > { %v3445_v1 = vpop.eup %3444  ;;  %2555 = vmatpush1.bf16.msra.mxu1 %v3443_v47 }
 0xc3b   : > { %2556 = vmatprep.subr.bf16.mxu1 %v3445_v1  ;;  %v3447_v63 = vpop.eup %3446 }
 0xc3c   : > { %v3449_v2 = vpop.eup %3448 }
 0xc3d   : > { %v3451_v6 = vpop.eup %3450 }
 0xc3e   : > { %2557 = vmatpush1.bf16.msra.mxu1 %v3447_v63  ;;  %v3453_v11 = vpop.eup %3452  ;;  %v2789_v63 = vpop.permute.xlu0 %2788 }
 0xc3f   : > { %2558 = vmatprep.subr.bf16.mxu1 %v3449_v2  ;;  %v3455_v12 = vpop.eup %3454 }
 0xc42   : > { %2559 = vmatpush1.bf16.msra.mxu1 %v3451_v6  ;;  %v2784_v6 = vpop.permute.xlu1 %2783 }
 0xc43   : > { %2560 = vmatprep.subr.bf16.mxu1 %v3453_v11 }
 0xc46   : > { %2561 = vmatpush1.bf16.msra.mxu1 %v3455_v12 }
 0xc49   : > { %3215 = vmatmul.mubr.msk.bf16.vlgmr.msra.gmra.mxu1 %vm976_vm1, %v4328_v29 }
 0xc4a   : > { %2653 = vmatprep.mubr.bf16.mxu1 %v3576_v0 }
 0xd09   : > { %v2580_v23 = vpop.f32.mrf.mxu1 }
 0xd0a   : > { %v2581_v18 = vadd.f32 %v2580_v23, %v4075_v32 }
 0xd0b   : > { %v2582_v54 = vpop.f32.mrf.mxu1 }
 0xd0c   : > { %v2583_v51 = vadd.f32 %v2582_v54, %v4075_v32  ;;  %v2603_v40 = vmul.f32 %v2596_v46, %v2581_v18 }
 0xd0d   : > { %v2584_v16 = vpop.f32.mrf.mxu1 }
 0xd0e   : > { %v2585_v15 = vadd.f32 %v2584_v16, %v4079_v39  ;;  %v2604_v20 = vmul.f32 %v2600_v52, %v2583_v51  ;;  %v4399_v5 = vadd.f32 %v2603_v40, %v4353_v14  ;;  %v2774_v16 = vpop.permute.xlu1 %2773 }
 0xd0f   : > { %v2586_v28 = vpop.f32.mrf.mxu1 }
 0xd10   : > { %v2605_v26 = vmul.f32 %v2596_v46, %v2585_v15  ;;  %v2587_v50 = vadd.f32 %v2586_v28, %v4079_v39  ;;  %v4393_v10 = vadd.f32 %v2604_v20, %v4347_v25 }
 0xd12   : > { %v2606_v4 = vmul.f32 %v2600_v52, %v2587_v50  ;;  %v4390_v57 = vadd.f32 %v2605_v26, %v4344_v60  ;;  %v2779_v52 = vpop.permute.xlu0 %2778 }
 0xd14   : > { %v4396_v49 = vadd.f32 %v2606_v4, %v4350_v45  ;;  %v2619_v42 = vpack.c.bf16 %v4390_v57, %v4399_v5 }
 0xd16   : > { %v2620_v9 = vpack.c.bf16 %v4396_v49, %v4393_v10 }
 0xd18   : > { %2635 = vmatprep.subr.bf16.mxu1 %v2620_v9  ;;  %v2851_v9 = vstv %s3238_s28 }
 0xd19   : > { %2636 = vmatpush1.bf16.msra.mxu1 %v2619_v42  ;;  %v2852_v42 = vmul.f32 %v4334_v37, %v2851_v9 }
 0xd1c   : > { %3217 = vmatmul.mubr.msk.bf16.vlgmr.msra.gmra.mxu1 %vm588_vm0, %v4196_v27 }
 0xd1d   : > { %2663 = vmatprep.mubr.bf16.mxu1 %v3576_v0 }
 0xd24   : > { %3218 = vmatmul.mubr.msk.bf16.gmra.mxu1 %vm588_vm0, %v4204_v35 }
 0xd25   : > { %2673 = vmatprep.mubr.bf16.mxu1 %v3576_v0 }
 0xd2c   : > { %3219 = vmatmul.mubr.msk.bf16.gmra.mxu1 %vm588_vm0, %v4258_v17 }
 0xd2d   : > { %2683 = vmatprep.mubr.bf16.mxu1 %v3576_v0 }
 0xd34   : > { %3220 = vmatmul.mubr.msk.bf16.gmra.mxu1 %vm588_vm0, %v4266_v21 }
 0xddc   : > { %v2655_v60 = vpop.f32.mrf.mxu1 }
 0xdde   : > { %v2657_v25 = vpop.f32.mrf.mxu1 }
 0xde0   : > { %v2659_v45 = vpop.f32.mrf.mxu1 }
 0xde1   : > { %v2694_v18 = vpack.c.bf16 %v2659_v45, %v2655_v60  ;;  %v2857_v60 = vrot.slane %v2852_v42, %v4073_v38 }
 0xde2   : > { %v2661_v14 = vpop.f32.mrf.mxu1 }
 0xde3   : > { %v2695_v23 = vpack.c.bf16 %v2661_v14, %v2657_v25  ;;  %v2861_v14 = vrot.slane %v2852_v42, %v4070_v7 }
 0xde4   : > { %v2665_v27 = vpop.f32.mrf.mxu1 }
 0xde5   : > { %v2751_v46 = vadd.bf16 %v4038_v53, %v2695_v23 }
 0xde6   : > { %v2667_v56 = vpop.f32.mrf.mxu1 }
 0xde7   : > { %v2792_v28 = vadd.bf16 %v2774_v16, %v2751_v46 }
 0xde8   : > { %v2669_v13 = vpop.f32.mrf.mxu1 }
 0xde9   : > { %v2696_v11 = vpack.c.bf16 %v2669_v13, %v2665_v27 }
 0xdea   : > { %v2671_v43 = vpop.f32.mrf.mxu1 }
 0xdeb   : > { %v2697_v21 = vpack.c.bf16 %v2671_v43, %v2667_v56 }
 0xdec   : > { %v2675_v24 = vpop.f32.mrf.mxu1 }
 0xded   : > { %v2753_v55 = vadd.bf16 %v4024_v31, %v2697_v21 }
 0xdee   : > { %v2677_v35 = vpop.f32.mrf.mxu1 }
 0xdf0   : > { %v2679_v30 = vpop.f32.mrf.mxu1 }
 0xdf1   : > { %v2698_v36 = vpack.c.bf16 %v2679_v30, %v2675_v24 }
 0xdf2   : > { %v2681_v58 = vpop.f32.mrf.mxu1 }
 0xdf3   : > { %v2699_v17 = vpack.c.bf16 %v2681_v58, %v2677_v35  ;;  %v2754_v12 = vadd.bf16 %v4026_v41, %v2698_v36  ;;  %v2750_v41 = vadd.bf16 %v4046_v33, %v2694_v18 }
 0xdf4   : > { %v2685_v19 = vpop.f32.mrf.mxu1 }
 0xdf5   : > { %v2755_v3 = vadd.bf16 %v4020_v59, %v2699_v17  ;;  %v2752_v59 = vadd.bf16 %v4035_v34, %v2696_v11  ;;  %v2791_v31 = vadd.bf16 %v2774_v16, %v2750_v41 }
 0xdf6   : > { %v2687_v61 = vpop.f32.mrf.mxu1 }
 0xdf7   : > { %v2796_v54 = vadd.bf16 %v2784_v6, %v2755_v3  ;;  %v2793_v15 = vadd.bf16 %v2779_v52, %v2752_v59 }
 0xdf8   : > { %v2689_v62 = vpop.f32.mrf.mxu1 }
 0xdf9   : > { %v2700_v0 = vpack.c.bf16 %v2689_v62, %v2685_v19 }
 0xdfa   : > { %v2691_v48 = vpop.f32.mrf.mxu1 }
 0xdfb   : > { %v2756_v47 = vadd.bf16 %v4022_v8, %v2700_v0  ;;  %v2701_v1 = vpack.c.bf16 %v2691_v48, %v2687_v61  ;;  %v2795_v8 = vadd.bf16 %v2784_v6, %v2754_v12 }
 0xdfd   : > { %v2757_v2 = vadd.bf16 %v4030_v22, %v2701_v1  ;;  %v2797_v44 = vadd.bf16 %v2789_v63, %v2756_v47  ;;  %v2794_v22 = vadd.bf16 %v2779_v52, %v2753_v55 }
 0xdff   : > { %v2798_v51 = vadd.bf16 %v2789_v63, %v2757_v2 }
 0xe01   : > { %3456 = vtanh.bf16 %v2798_v51 }
 0xe02   : > { %3458 = vtanh.bf16 %v2797_v44 }
 0xe03   : > { %3460 = vtanh.bf16 %v2796_v54 }
 0xe04   : > { %3462 = vtanh.bf16 %v2795_v8 }
 0xe05   : > { %3464 = vtanh.bf16 %v2794_v22 }
 0xe06   : > { %3466 = vtanh.bf16 %v2793_v15 }
 0xe07   : > { %3468 = vtanh.bf16 %v2792_v28 }
 0xe08   : > { %3470 = vtanh.bf16 %v2791_v31 }
 0xe0f   : > { %v3457_v20 = vpop.eup %3456 }
 0xe10   : > { %v3459_v26 = vpop.eup %3458  ;;  %2815 = vmatprep.subr.bf16.mxu0 %v3457_v20 }
 0xe11   : > { %v3461_v34 = vpop.eup %3460  ;;  %2816 = vmatpush1.bf16.msra.mxu0 %v3459_v26 }
 0xe12   : > { %2817 = vmatprep.subr.bf16.mxu0 %v3461_v34  ;;  %v3463_v53 = vpop.eup %3462 }
 0xe13   : > { %v3465_v50 = vpop.eup %3464 }
 0xe14   : > { %v3467_v33 = vpop.eup %3466 }
 0xe15   : > { %2818 = vmatpush1.bf16.msra.mxu0 %v3463_v53  ;;  %v3469_v40 = vpop.eup %3468 }
 0xe16   : > { %2819 = vmatprep.subr.bf16.mxu0 %v3465_v50  ;;  %v3471_v4 = vpop.eup %3470 }
 0xe19   : > { %2820 = vmatpush1.bf16.msra.mxu0 %v3467_v33 }
 0xe1a   : > { %2821 = vmatprep.subr.bf16.mxu0 %v3469_v40 }
 0xe1d   : > { %2822 = vmatpush1.bf16.msra.mxu0 %v3471_v4 }
 0xe20   : > { %3237 = vmatmul.mubr.msk.bf16.vlgmr.msra.gmra.mxu0 %vm976_vm1, %v4328_v29 }
 0xee0   : > { %v2841_v25 = vpop.f32.mrf.mxu0 }
 0xee1   : > { %v2842_v45 = vadd.f32 %v2841_v25, %v4075_v32 }
 0xee2   : > { %v2843_v27 = vpop.f32.mrf.mxu0 }
 0xee3   : > { %v2864_v56 = vmul.f32 %v2857_v60, %v2842_v45  ;;  %v2844_v13 = vadd.f32 %v2843_v27, %v4075_v32 }
 0xee4   : > { %v2845_v43 = vpop.f32.mrf.mxu0 }
 0xee5   : > { %v2868_v29 = vadd.f32 %v2864_v56, %v4399_v5  ;;  %v2865_v24 = vmul.f32 %v2861_v14, %v2844_v13  ;;  %v2846_v37 = vadd.f32 %v2845_v43, %v4079_v39 }
 0xee6   : > { %v2847_v35 = vpop.f32.mrf.mxu0 }
 0xee7   : > { %2880 = vst [vmem:[%s456_s30] sm:$0xff] %v2868_v29  ;;  %v2869_v38 = vadd.f32 %v2865_v24, %v4393_v10  ;;  %v2866_v30 = vmul.f32 %v2857_v60, %v2846_v37  ;;  %v2848_v7 = vadd.f32 %v2847_v35, %v4079_v39 }
 0xee9   : > { %2881 = vst [vmem:[%s456_s30 + $0x8] sm:$0xff] %v2869_v38  ;;  %v2870_v32 = vadd.f32 %v2866_v30, %v4390_v57  ;;  %v2867_v58 = vmul.f32 %v2861_v14, %v2848_v7 }
 0xeeb   : > { %2882 = vst [vmem:[%s456_s30 + $0x10] sm:$0xff] %v2870_v32  ;;  %v2871_v10 = vadd.f32 %v2867_v58, %v4396_v49 }
 0xeed   : > { %2883 = vst [vmem:[%s456_s30 + $0x18] sm:$0xff] %v2871_v10 }
 0xeee   : > { %3506 = shalt.err (!%p3503_p3)
}
 0xeef   : > { %s3507_s28 = scalar_lea.hbm %s4443_s0, 512  ;;  %s3511_s30 = scalar_lea.hbm %s4501_s10, 1024 }
 0xef0   : > { %p3508_p5 = scmp.ne.s32.totalorder %s4443_s0, %s3507_s28  ;;  %p3512_p9 = scmp.lt.s32.totalorder %s4443_s0, %s4501_s10 }
 0xef1   : > { %p3513_p12 = scmp.lt.s32.totalorder %s3511_s30, %s3507_s28 }
 0xef2   : > { %p3509_p6 = pnand %p3508_p5, %p3675_p4 }
 0xef3   : > { %p3514_p10 = por %p3513_p12, %p3512_p9 }
 0xef4   : > { %p3510_p7 = pneg %p3509_p6 }
 0xef6   : > { %p3515_p11 = pnand %p3514_p10, %p3510_p7 }
 0xef8   : > { %3518 = shalt.err (!%p3515_p11)
}
 0xef9   : > { %s3578_s19 = smov 256   ;;  %s3579_s16 = smov 16  }
 0xefa   : > { %3268 = dma.vmem_to_hbm [thread:$0]  (%p3675_p4), %s4438_s11, 512, %s4443_s0, %s4446_s20, %s3578_s19, %s3578_s19, %s3579_s16  }
 0xefb PF: > { %p3280_p13 = scmp.ge.s32.totalorder %s3573_s18, 2  ;;  %s2915_s24 = sand.u32 1, %s3553_s13  }
 0xefc   : > { %s2916_s27 = scalar_lea.sflag [#allocation5], %s2915_s24 }
 0xefd   : > { %p3275_p0 = pnand %p3280_p13, %p3682_p8 }
 0xeff   : > { %p3276_p1 = pneg %p3275_p0 }
 0xf01   : > { %3548 = dma.done.wait (%p3276_p1), %s2916_s27, 512  }
 0xf02   : > { %3550 = vsyncadd (%p3276_p1), %s2916_s27, 4294966784  ;;  %s24_s18 = sadd.s32 1, %s3573_s18   ;;  %s4512_s23 = sld [smem:[#allocation10_spill]] }
 0xf03   : > { %p21_p2 = scmp.ge.s32.totalorder %s24_s18, 4   ;;  %s4513_s13 = smov %s3557_s14 }
 0xf04   : > { %s4514_s14 = smov %s3561_s15  ;;  %s4515_s15 = smov %s3688_s26 }
 0xf05   : > { %s4516_s16 = smov %s3569_s17  ;;  %23 = sbr.rel (!%p21_p2) target bundleno = 8 (0x8), region = 116 }
 0xf08   : > { %s4517_s17 = smov %s4512_s23 }
 0xf0a   :  { %2921 = vsyncpa [#allocation5], 1 }
 0xf0b   :  { %2923 = vsyncpa [#allocation5 + $0x1], 1 }
 0xf0c   :  { %2924 = vsyncpa [#allocation6], 1 }
 0xf0d   :  { %2926 = vsyncpa [#allocation6 + $0x1], 1 }

</bundles_post_ra>
